<compile_context>
chip_gen: v7x
topology: tpu7x:2x2x1
jax: 0.10.0
libtpu: 0.0.40
codegen_flags: <defaults>
</compile_context>

<pallas_src>
import functools

import jax
import jax.numpy as jnp
from jax import lax
from jax.experimental import pallas as pl
from jax.experimental.pallas import tpu as pltpu


def _round_up(x, m):
    return ((x + m - 1) // m) * m


def _pick_batch_block(B, T, Hp, Dgm, Dc, Dop, budget_bytes=24 << 20):
    """Largest multiple-of-8 batch block whose per-block VMEM fits the budget."""
    bb = min(_round_up(max(B, 1), 8), 256)

    def vmem_bytes(b):
        dbl = 2  # pipeline double-buffering of pallas-managed blocks
        inputs = dbl * 4 * (T * b * Dgm + T * b * Dc + b * 1)
        outputs = dbl * 4 * (T * b * Dop)
        scratch = 4 * (T * b * 4 * Hp + T * b * Hp + T * b * 1)
        weights = dbl * 4 * (Dgm * 4 * Hp + Hp * 4 * Hp + 4 * Hp
                             + Hp * Dop + Dc * Dop + Dop)
        return inputs + outputs + scratch + weights

    while bb > 8 and vmem_bytes(bb) > budget_bytes:
        bb -= 8
    return bb


# ----------------------------------------------------------------------------
# Pallas kernel: fused {packed-LSTM recurrence, folded dense branch, output}.
# All recurrent work is a single (Bb, Hp) x (Hp, 4Hp) matmul + gate math per
# step; everything else is batched over T*Bb outside the loop.
# ----------------------------------------------------------------------------
def _lstm_cat_cat_kernel(xgm_ref,    # (T, Bb, Dgm)  grade+major inputs
                         xc_ref,     # (T, Bb, Dc)   course inputs
                         len_ref,    # (Bb, 1) int32 sequence lengths
                         wih_ref,    # (Dgm, 4Hp)    LSTM input weights (pre-T, gate-padded, i/f/o/g)
                         whh_ref,    # (Hp,  4Hp)    LSTM hidden weights (pre-T, gate-padded, i/f/o/g)
                         blstm_ref,  # (1,   4Hp)    b_ih + b_hh (gate-padded, i/f/o/g)
                         wol_ref,    # (Hp,  Dop)    hidden_to_output (lstm half, pre-T)
                         wcd_ref,    # (Dc,  Dop)    folded course->output weight
                         bo_ref,     # (1,   Dop)    folded output bias
                         out_ref,    # (T, Bb, Dop)
                         xproj_sc,   # (T, Bb, 4Hp)  VMEM scratch: x @ W_ih + b
                         hout_sc,    # (T, Bb, Hp)   VMEM scratch: masked lstm outputs
                         mask_sc):   # (T, Bb, 1)    VMEM scratch: validity mask (f32)
    T, Bb, Dgm = xgm_ref.shape
    Hp = whh_ref.shape[0]
    Dc = xc_ref.shape[2]
    Dop = out_ref.shape[2]

    # ---- Hoisted, non-recurrent work: one big input-projection matmul. ----
    xgm_flat = xgm_ref[...].reshape(T * Bb, Dgm)
    xproj = (jnp.dot(xgm_flat, wih_ref[...], preferred_element_type=jnp.float32)
             + blstm_ref[...])                                  # (T*Bb, 4Hp)
    xproj_sc[...] = xproj.reshape(T, Bb, 4 * Hp)

    # pack_padded_sequence semantics: validity mask computed once.
    t_idx = lax.broadcasted_iota(jnp.int32, (T, Bb, 1), 0)
    lens = len_ref[...].reshape(1, Bb, 1)
    mask_sc[...] = (t_idx < lens).astype(jnp.float32)

    # Loop-invariant hidden weight kept resident across all steps.
    w_hh = whh_ref[...]                                         # (Hp, 4Hp)

    def step(t, carry):
        h, c = carry
        # Only recurrence-dependent work on the critical path.
        gates = xproj_sc[t] + jnp.dot(h, w_hh,
                                      preferred_element_type=jnp.float32)
        # Gates pre-packed in (i, f, o, g) order: one contiguous sigmoid block
        # (3*Hp lanes) and one contiguous tanh block (Hp lanes).
        sig = jax.nn.sigmoid(gates[:, :3 * Hp])
        i_g = sig[:, 0 * Hp:1 * Hp]
        f_g = sig[:, 1 * Hp:2 * Hp]
        o_g = sig[:, 2 * Hp:3 * Hp]
        g_g = jnp.tanh(gates[:, 3 * Hp:4 * Hp])

        c_new = f_g * c + i_g * g_g
        h_new = o_g * jnp.tanh(c_new)

        m = mask_sc[t]                                          # (Bb, 1)
        # Finished sequences: freeze state, emit zeros (pad_packed semantics).
        hout_sc[t] = h_new * m
        h_next = h + (h_new - h) * m
        c_next = c + (c_new - c) * m
        return (h_next, c_next)

    h0 = jnp.zeros((Bb, Hp), jnp.float32)
    c0 = jnp.zeros((Bb, Hp), jnp.float32)
    unroll = True if T <= 16 else 4
    lax.fori_loop(0, T, step, (h0, c0), unroll=unroll)

    # ---- Batched epilogue: folded dense branch + lane-dense output store. ----
    h_all = hout_sc[...].reshape(T * Bb, Hp)
    xc_flat = xc_ref[...].reshape(T * Bb, Dc)
    out = (jnp.dot(h_all, wol_ref[...], preferred_element_type=jnp.float32)
           + jnp.dot(xc_flat, wcd_ref[...], preferred_element_type=jnp.float32)
           + bo_ref[...])                                       # (T*Bb, Dop)
    out_ref[...] = out.reshape(T, Bb, Dop).astype(out_ref.dtype)


# ----------------------------------------------------------------------------
# Wrapper: parameter layout (gate-block padding & i/f/o/g reorder,
# pre-transposition, dense-branch folding), batch/hidden padding,
# batch-first <-> time-major transposes, adaptive batch grid.
# ----------------------------------------------------------------------------
@functools.partial(jax.jit, static_argnames=("dim_input_course",))
def lstm_cat_cat_forward(params, batch_data, batch_data_length, *,
                         dim_input_course):
    B, T, _ = batch_data.shape
    w_ih, w_hh, b_ih, b_hh = params["w_ih"], params["w_hh"], params["b_ih"], params["b_hh"]
    w_c, b_c = params["w_course"], params["b_course"]
    w_o, b_o = params["w_out"], params["b_out"]

    H = w_hh.shape[1]
    Dout = w_o.shape[0]
    Dc = dim_input_course
    Dgm = w_ih.shape[1]

    Hp = _round_up(H, 128)              # lane-aligned gate blocks / full vregs
    Dop = _round_up(Dout, 128)          # lane-dense output stores
    Bb = _pick_batch_block(B, T, Hp, Dgm, Dc, Dop)   # whole-sublane batch block
    Bp = _round_up(B, Bb)

    # Read batch_data once: transpose to time-major, then split columns.
    x_t = jnp.transpose(batch_data.astype(jnp.float32), (1, 0, 2))   # (T, B, D)
    x_t = jnp.pad(x_t, ((0, 0), (0, Bp - B), (0, 0)))                 # (T, Bp, D)
    xc_t = x_t[:, :, :Dc]                                             # (T, Bp, Dc)
    xgm_t = x_t[:, :, Dc:]                                            # (T, Bp, Dgm)

    lens = jnp.pad(batch_data_length.astype(jnp.int32), (0, Bp - B))
    lens = lens.reshape(Bp, 1)

    # --- LSTM weight prep: pre-transpose, reorder gates to (i,f,o,g), pad each
    #     gate to an Hp-wide lane block. ---
    def gate_block(w):                  # (4H, X) -> (X, 4Hp), gate order i,f,o,g
        i, f, g, o = jnp.split(w.astype(jnp.float32), 4, axis=0)      # PyTorch i,f,g,o
        gs = [jnp.pad(x.T, ((0, 0), (0, Hp - H))) for x in (i, f, o, g)]
        return jnp.concatenate(gs, axis=1)

    wih_p = gate_block(w_ih)                                       # (Dgm, 4Hp)
    whh_p = jnp.pad(gate_block(w_hh), ((0, Hp - H), (0, 0)))       # (Hp,  4Hp)
    bi, bf, bg, bo_g = jnp.split((b_ih + b_hh).astype(jnp.float32), 4)
    blstm = jnp.concatenate(
        [jnp.pad(g, (0, Hp - H)) for g in (bi, bf, bo_g, bg)]).reshape(1, 4 * Hp)

    # --- Output-projection prep; fold the course Linear into the output Linear:
    #     (x_c @ Wc^T + bc) @ Wod^T + bo == x_c @ (Wc^T Wod^T) + (bc Wod^T + bo)
    w_ol = w_o[:, :H].astype(jnp.float32).T                        # (H, Dout)
    w_od = w_o[:, H:].astype(jnp.float32).T                        # (H, Dout)
    wol_p = jnp.pad(w_ol, ((0, Hp - H), (0, Dop - Dout)))          # (Hp, Dop)
    w_cd = w_c.astype(jnp.float32).T @ w_od                        # (Dc, Dout)
    wcd_p = jnp.pad(w_cd, ((0, 0), (0, Dop - Dout)))               # (Dc, Dop)
    b_comb = b_c.astype(jnp.float32) @ w_od + b_o.astype(jnp.float32)
    bo_p = jnp.pad(b_comb, (0, Dop - Dout)).reshape(1, Dop)        # (1, Dop)

    grid = (Bp // Bb,)
    in_specs = [
        pl.BlockSpec((T, Bb, Dgm), lambda b: (0, b, 0)),
        pl.BlockSpec((T, Bb, Dc), lambda b: (0, b, 0)),
        pl.BlockSpec((Bb, 1), lambda b: (b, 0)),
        pl.BlockSpec(wih_p.shape, lambda b: (0, 0)),
        pl.BlockSpec(whh_p.shape, lambda b: (0, 0)),
        pl.BlockSpec(blstm.shape, lambda b: (0, 0)),
        pl.BlockSpec(wol_p.shape, lambda b: (0, 0)),
        pl.BlockSpec(wcd_p.shape, lambda b: (0, 0)),
        pl.BlockSpec(bo_p.shape, lambda b: (0, 0)),
    ]
    out_spec = pl.BlockSpec((T, Bb, Dop), lambda b: (0, b, 0))
    scratch_shapes = [
        pltpu.VMEM((T, Bb, 4 * Hp), jnp.float32),   # hoisted input projection
        pltpu.VMEM((T, Bb, Hp), jnp.float32),       # per-step lstm outputs
        pltpu.VMEM((T, Bb, 1), jnp.float32),        # validity mask
    ]

    out_p = pl.pallas_call(
        _lstm_cat_cat_kernel,
        out_shape=jax.ShapeDtypeStruct((T, Bp, Dop), jnp.float32),
        grid=grid,
        in_specs=in_specs,
        out_specs=out_spec,
        scratch_shapes=scratch_shapes,
        compiler_params=pltpu.CompilerParams(
            dimension_semantics=("parallel",)),     # dual-TC batch split on v7x
    )(xgm_t, xc_t, lens, wih_p, whh_p, blstm, wol_p, wcd_p, bo_p)

    # Strip padding, back to batch-first (B, T, Dout).
    return jnp.transpose(out_p[:, :B, :Dout], (1, 0, 2))


# ----------------------------------------------------------------------------
# Pure-JAX reference (same math as PyTorch module, no Pallas, no folding).
# ----------------------------------------------------------------------------
def lstm_cat_cat_forward_ref(params, batch_data, batch_data_length, *,
                             dim_input_course):
    B, T, _ = batch_data.shape
    w_ih, w_hh, b_ih, b_hh = params["w_ih"], params["w_hh"], params["b_ih"], params["b_hh"]
    w_c, b_c = params["w_course"], params["b_course"]
    w_o, b_o = params["w_out"], params["b_out"]
    H = w_hh.shape[1]

    x_course = batch_data[:, :, :dim_input_course].astype(jnp.float32)
    x_gm = batch_data[:, :, dim_input_course:].astype(jnp.float32)
    lens = batch_data_length.astype(jnp.int32)

    def step(carry, xs):
        h, c = carry
        x_t, t = xs
        gates = x_t @ w_ih.T + h @ w_hh.T + b_ih + b_hh
        i_g = jax.nn.sigmoid(gates[:, 0 * H:1 * H])
        f_g = jax.nn.sigmoid(gates[:, 1 * H:2 * H])
        g_g = jnp.tanh(gates[:, 2 * H:3 * H])
        o_g = jax.nn.sigmoid(gates[:, 3 * H:4 * H])
        c_new = f_g * c + i_g * g_g
        h_new = o_g * jnp.tanh(c_new)
        valid = (lens > t)[:, None]
        h_c = jnp.where(valid, h_new, h)
        c_c = jnp.where(valid, c_new, c)
        h_out = jnp.where(valid, h_new, 0.0)
        return (h_c, c_c), h_out

    h0 = jnp.zeros((B, H), jnp.float32)
    c0 = jnp.zeros((B, H), jnp.float32)
    xs = (jnp.transpose(x_gm, (1, 0, 2)), jnp.arange(T, dtype=jnp.int32))
    _, lstm_out_tm = lax.scan(step, (h0, c0), xs)
    lstm_out = jnp.transpose(lstm_out_tm, (1, 0, 2))          # (B, T, H)

    dense_out = x_course @ w_c.T + b_c                         # (B, T, H)
    cat = jnp.concatenate([lstm_out, dense_out], axis=-1)      # (B, T, 2H)
    return cat @ w_o.T + b_o                                   # (B, T, Dout)


# ----------------------------------------------------------------------------
# Deterministic parameter init (shapes follow the nn.Module __init__).
# ----------------------------------------------------------------------------
def init_params(key, dim_input_course, dim_input_grade, dim_input_major,
                nb_lstm_units):
    dgm = dim_input_grade + dim_input_major
    H = nb_lstm_units
    dout = dim_input_grade
    ks = jax.random.split(key, 8)
    k_lstm = 1.0 / jnp.sqrt(H)
    k_course = 1.0 / jnp.sqrt(dim_input_course)
    k_out = 1.0 / jnp.sqrt(2 * H)
    u = lambda k, shape, s: jax.random.uniform(k, shape, jnp.float32, -s, s)
    return {
        "w_ih": u(ks[0], (4 * H, dgm), k_lstm),
        "w_hh": u(ks[1], (4 * H, H), k_lstm),
        "b_ih": u(ks[2], (4 * H,), k_lstm),
        "b_hh": u(ks[3], (4 * H,), k_lstm),
        "w_course": u(ks[4], (H, dim_input_course), k_course),
        "b_course": u(ks[5], (H,), k_course),
        "w_out": u(ks[6], (dout, 2 * H), k_out),
        "b_out": u(ks[7], (dout,), k_out),
    }


if __name__ == "__main__":
    # Small, forward-consistent shapes.
    B, T = 2, 8
    dim_input_course, dim_input_grade, dim_input_major = 8, 4, 6
    H = 32

    key = jax.random.PRNGKey(0)
    k_par, k_x = jax.random.split(key)
    params = init_params(k_par, dim_input_course, dim_input_grade,
                         dim_input_major, H)

    D = dim_input_course + dim_input_grade + dim_input_major  # 18
    batch_data = jax.random.normal(k_x, (B, T, D), jnp.float32)
    # pack_padded_sequence expects descending lengths; max length == seq_len.
    batch_data_length = jnp.array([8, 6], dtype=jnp.int32)

    out = lstm_cat_cat_forward(params, batch_data, batch_data_length,
                               dim_input_course=dim_input_course)
    out = jax.block_until_ready(out)

    ref = lstm_cat_cat_forward_ref(params, batch_data, batch_data_length,
                                   dim_input_course=dim_input_course)
    assert out.shape == (B, T, dim_input_grade), out.shape
    assert jnp.allclose(out, ref, atol=2e-3, rtol=2e-3), \
        float(jnp.max(jnp.abs(out - ref)))

    print("KERNEL_OK")
</pallas_src>

<mosaic_0001>
module attributes {stable_mosaic.version = 11 : i64} {
  func.func @_lstm_cat_cat_kernel(%arg0: i32, %arg1: memref<8x8x10xf32, #tpu.memory_space<vmem>>, %arg2: memref<8x8x8xf32, #tpu.memory_space<vmem>>, %arg3: memref<8x1xi32, #tpu.memory_space<vmem>>, %arg4: memref<10x512xf32, #tpu.memory_space<vmem>>, %arg5: memref<128x512xf32, #tpu.memory_space<vmem>>, %arg6: memref<1x512xf32, #tpu.memory_space<vmem>>, %arg7: memref<128x128xf32, #tpu.memory_space<vmem>>, %arg8: memref<8x128xf32, #tpu.memory_space<vmem>>, %arg9: memref<1x128xf32, #tpu.memory_space<vmem>>, %arg10: memref<8x8x128xf32, #tpu.memory_space<vmem>>, %arg11: memref<8x8x512xf32, #tpu.memory_space<vmem>>, %arg12: memref<8x8x128xf32, #tpu.memory_space<vmem>>, %arg13: memref<8x8x1xf32, #tpu.memory_space<vmem>>) attributes {dimension_semantics = [#tpu.dimension_semantics<parallel>], iteration_bounds = array<i64: 1>, scalar_prefetch = 0 : i64, scratch_operands = 3 : i64, tpu.core_type = #tpu.core_type<tc>, window_params = [{transform_indices = @transform_0, window_bounds = array<i64: 8, 8, 10>}, {transform_indices = @transform_1, window_bounds = array<i64: 8, 8, 8>}, {transform_indices = @transform_2, window_bounds = array<i64: 8, 1>}, {pipeline_mode = #tpu.pipeline_mode<synchronous>, transform_indices = @transform_3, window_bounds = array<i64: 10, 512>}, {pipeline_mode = #tpu.pipeline_mode<synchronous>, transform_indices = @transform_4, window_bounds = array<i64: 128, 512>}, {pipeline_mode = #tpu.pipeline_mode<synchronous>, transform_indices = @transform_5, window_bounds = array<i64: 1, 512>}, {pipeline_mode = #tpu.pipeline_mode<synchronous>, transform_indices = @transform_6, window_bounds = array<i64: 128, 128>}, {pipeline_mode = #tpu.pipeline_mode<synchronous>, transform_indices = @transform_7, window_bounds = array<i64: 8, 128>}, {pipeline_mode = #tpu.pipeline_mode<synchronous>, transform_indices = @transform_8, window_bounds = array<i64: 1, 128>}, {transform_indices = @transform_9, window_bounds = array<i64: 8, 8, 128>}]} {
    %c0 = arith.constant 0 : index
    %c0_0 = arith.constant 0 : index
    %c0_1 = arith.constant 0 : index
    %0 = vector.load %arg1[%c0, %c0_0, %c0_1] : memref<8x8x10xf32, #tpu.memory_space<vmem>>, vector<8x8x10xf32>
    %1 = vector.shape_cast %0 : vector<8x8x10xf32> to vector<64x10xf32>
    %c0_2 = arith.constant 0 : index
    %c0_3 = arith.constant 0 : index
    %2 = vector.load %arg4[%c0_2, %c0_3] : memref<10x512xf32, #tpu.memory_space<vmem>>, vector<10x512xf32>
    %cst = arith.constant dense<0.000000e+00> : vector<64x512xf32>
    %3 = tpu.matmul %1, %2, %cst {dimension_numbers = #tpu.dot_dimension_numbers<[1], [0], [0], [1], [0, 0, 1, 1], [], []>} : vector<64x10xf32>, vector<10x512xf32>, vector<64x512xf32> -> vector<64x512xf32>
    %c0_4 = arith.constant 0 : index
    %c0_5 = arith.constant 0 : index
    %4 = vector.load %arg6[%c0_4, %c0_5] : memref<1x512xf32, #tpu.memory_space<vmem>>, vector<1x512xf32>
    %5 = vector.broadcast %4 : vector<1x512xf32> to vector<64x512xf32>
    %6 = arith.addf %3, %5 : vector<64x512xf32>
    %7 = vector.shape_cast %6 : vector<64x512xf32> to vector<8x8x512xf32>
    %c0_6 = arith.constant 0 : index
    %c0_7 = arith.constant 0 : index
    %c0_8 = arith.constant 0 : index
    %8 = vector.load %arg11[%c0_6, %c0_7, %c0_8] : memref<8x8x512xf32, #tpu.memory_space<vmem>>, vector<8x8x512xf32>
    tpu.vector_store %arg11[%c0_6, %c0_7, %c0_8], %7 {strides = array<i32>} : memref<8x8x512xf32, #tpu.memory_space<vmem>>, vector<8x8x512xf32>,
    %9 = tpu.iota {dimensions = array<i32: 0>} : vector<8x8x1xi32>
    %c0_9 = arith.constant 0 : index
    %c0_10 = arith.constant 0 : index
    %10 = vector.load %arg3[%c0_9, %c0_10] : memref<8x1xi32, #tpu.memory_space<vmem>>, vector<8x1xi32>
    %11 = vector.shape_cast %10 : vector<8x1xi32> to vector<1x8x1xi32>
    %12 = vector.broadcast %11 : vector<1x8x1xi32> to vector<8x8x1xi32>
    %13 = arith.cmpi slt, %9, %12 : vector<8x8x1xi32>
    %14 = arith.extui %13 : vector<8x8x1xi1> to vector<8x8x1xi32>
    %15 = arith.sitofp %14 : vector<8x8x1xi32> to vector<8x8x1xf32>
    %c0_11 = arith.constant 0 : index
    %c0_12 = arith.constant 0 : index
    %c0_13 = arith.constant 0 : index
    %16 = vector.load %arg13[%c0_11, %c0_12, %c0_13] : memref<8x8x1xf32, #tpu.memory_space<vmem>>, vector<8x8x1xf32>
    tpu.vector_store %arg13[%c0_11, %c0_12, %c0_13], %15 {strides = array<i32>} : memref<8x8x1xf32, #tpu.memory_space<vmem>>, vector<8x8x1xf32>,
    %c0_14 = arith.constant 0 : index
    %c0_15 = arith.constant 0 : index
    %17 = vector.load %arg5[%c0_14, %c0_15] : memref<128x512xf32, #tpu.memory_space<vmem>>, vector<128x512xf32>
    %cst_16 = arith.constant 0.000000e+00 : f32
    %18 = vector.broadcast %cst_16 : f32 to vector<8x128xf32>
    %cst_17 = arith.constant 0.000000e+00 : f32
    %19 = vector.broadcast %cst_17 : f32 to vector<8x128xf32>
    %c0_i32 = arith.constant 0 : i32
    %20 = arith.index_cast %c0_i32 : i32 to index
    %c0_18 = arith.constant 0 : index
    %c0_19 = arith.constant 0 : index
    %21 = vector.load %arg11[%20, %c0_18, %c0_19] : memref<8x8x512xf32, #tpu.memory_space<vmem>>, vector<1x8x512xf32>
    %22 = vector.shape_cast %21 : vector<1x8x512xf32> to vector<8x512xf32>
    %cst_20 = arith.constant dense<0.000000e+00> : vector<8x512xf32>
    %23 = tpu.matmul %18, %17, %cst_20 {dimension_numbers = #tpu.dot_dimension_numbers<[1], [0], [0], [1], [0, 0, 1, 1], [], []>} : vector<8x128xf32>, vector<128x512xf32>, vector<8x512xf32> -> vector<8x512xf32>
    %24 = arith.addf %22, %23 : vector<8x512xf32>
    %25 = vector.extract_strided_slice %24 {offsets = [0, 0], sizes = [8, 384], strides = [1, 1]} : vector<8x512xf32> to vector<8x384xf32>
    %26 = arith.negf %25 : vector<8x384xf32>
    %27 = math.exp %26 : vector<8x384xf32>
    %cst_21 = arith.constant 1.000000e+00 : f32
    %28 = vector.broadcast %cst_21 : f32 to vector<8x384xf32>
    %29 = arith.addf %28, %27 : vector<8x384xf32>
    %30 = arith.divf %28, %29 : vector<8x384xf32>
    %31 = vector.extract_strided_slice %30 {offsets = [0, 0], sizes = [8, 128], strides = [1, 1]} : vector<8x384xf32> to vector<8x128xf32>
    %32 = vector.extract_strided_slice %30 {offsets = [0, 128], sizes = [8, 128], strides = [1, 1]} : vector<8x384xf32> to vector<8x128xf32>
    %33 = vector.extract_strided_slice %30 {offsets = [0, 256], sizes = [8, 128], strides = [1, 1]} : vector<8x384xf32> to vector<8x128xf32>
    %34 = vector.extract_strided_slice %24 {offsets = [0, 384], sizes = [8, 128], strides = [1, 1]} : vector<8x512xf32> to vector<8x128xf32>
    %35 = math.tanh %34 : vector<8x128xf32>
    %36 = arith.mulf %32, %19 : vector<8x128xf32>
    %37 = arith.mulf %31, %35 : vector<8x128xf32>
    %38 = arith.addf %36, %37 : vector<8x128xf32>
    %39 = math.tanh %38 : vector<8x128xf32>
    %40 = arith.mulf %33, %39 : vector<8x128xf32>
    %41 = arith.index_cast %c0_i32 : i32 to index
    %c0_22 = arith.constant 0 : index
    %c0_23 = arith.constant 0 : index
    %42 = vector.load %arg13[%41, %c0_22, %c0_23] : memref<8x8x1xf32, #tpu.memory_space<vmem>>, vector<1x8x1xf32>
    %43 = vector.shape_cast %42 : vector<1x8x1xf32> to vector<8x1xf32>
    %44 = vector.broadcast %43 : vector<8x1xf32> to vector<8x128xf32>
    %45 = arith.mulf %40, %44 : vector<8x128xf32>
    %46 = arith.index_cast %c0_i32 : i32 to index
    %c0_24 = arith.constant 0 : index
    %c0_25 = arith.constant 0 : index
    %47 = vector.load %arg12[%46, %c0_24, %c0_25] : memref<8x8x128xf32, #tpu.memory_space<vmem>>, vector<1x8x128xf32>
    %48 = vector.shape_cast %47 : vector<1x8x128xf32> to vector<8x128xf32>
    %49 = vector.shape_cast %45 : vector<8x128xf32> to vector<1x8x128xf32>
    tpu.vector_store %arg12[%46, %c0_24, %c0_25], %49 {strides = array<i32>} : memref<8x8x128xf32, #tpu.memory_space<vmem>>, vector<1x8x128xf32>,
    %50 = arith.subf %40, %18 : vector<8x128xf32>
    %51 = vector.broadcast %43 : vector<8x1xf32> to vector<8x128xf32>
    %52 = arith.mulf %50, %51 : vector<8x128xf32>
    %53 = arith.addf %18, %52 : vector<8x128xf32>
    %54 = arith.subf %38, %19 : vector<8x128xf32>
    %55 = vector.broadcast %43 : vector<8x1xf32> to vector<8x128xf32>
    %56 = arith.mulf %54, %55 : vector<8x128xf32>
    %57 = arith.addf %19, %56 : vector<8x128xf32>
    %c1_i32 = arith.constant 1 : i32
    %58 = arith.index_cast %c1_i32 : i32 to index
    %c0_26 = arith.constant 0 : index
    %c0_27 = arith.constant 0 : index
    %59 = vector.load %arg11[%58, %c0_26, %c0_27] : memref<8x8x512xf32, #tpu.memory_space<vmem>>, vector<1x8x512xf32>
    %60 = vector.shape_cast %59 : vector<1x8x512xf32> to vector<8x512xf32>
    %cst_28 = arith.constant dense<0.000000e+00> : vector<8x512xf32>
    %61 = tpu.matmul %53, %17, %cst_28 {dimension_numbers = #tpu.dot_dimension_numbers<[1], [0], [0], [1], [0, 0, 1, 1], [], []>} : vector<8x128xf32>, vector<128x512xf32>, vector<8x512xf32> -> vector<8x512xf32>
    %62 = arith.addf %60, %61 : vector<8x512xf32>
    %63 = vector.extract_strided_slice %62 {offsets = [0, 0], sizes = [8, 384], strides = [1, 1]} : vector<8x512xf32> to vector<8x384xf32>
    %64 = arith.negf %63 : vector<8x384xf32>
    %65 = math.exp %64 : vector<8x384xf32>
    %cst_29 = arith.constant 1.000000e+00 : f32
    %66 = vector.broadcast %cst_29 : f32 to vector<8x384xf32>
    %67 = arith.addf %66, %65 : vector<8x384xf32>
    %68 = arith.divf %66, %67 : vector<8x384xf32>
    %69 = vector.extract_strided_slice %68 {offsets = [0, 0], sizes = [8, 128], strides = [1, 1]} : vector<8x384xf32> to vector<8x128xf32>
    %70 = vector.extract_strided_slice %68 {offsets = [0, 128], sizes = [8, 128], strides = [1, 1]} : vector<8x384xf32> to vector<8x128xf32>
    %71 = vector.extract_strided_slice %68 {offsets = [0, 256], sizes = [8, 128], strides = [1, 1]} : vector<8x384xf32> to vector<8x128xf32>
    %72 = vector.extract_strided_slice %62 {offsets = [0, 384], sizes = [8, 128], strides = [1, 1]} : vector<8x512xf32> to vector<8x128xf32>
    %73 = math.tanh %72 : vector<8x128xf32>
    %74 = arith.mulf %70, %57 : vector<8x128xf32>
    %75 = arith.mulf %69, %73 : vector<8x128xf32>
    %76 = arith.addf %74, %75 : vector<8x128xf32>
    %77 = math.tanh %76 : vector<8x128xf32>
    %78 = arith.mulf %71, %77 : vector<8x128xf32>
    %79 = arith.index_cast %c1_i32 : i32 to index
    %c0_30 = arith.constant 0 : index
    %c0_31 = arith.constant 0 : index
    %80 = vector.load %arg13[%79, %c0_30, %c0_31] : memref<8x8x1xf32, #tpu.memory_space<vmem>>, vector<1x8x1xf32>
    %81 = vector.shape_cast %80 : vector<1x8x1xf32> to vector<8x1xf32>
    %82 = vector.broadcast %81 : vector<8x1xf32> to vector<8x128xf32>
    %83 = arith.mulf %78, %82 : vector<8x128xf32>
    %84 = arith.index_cast %c1_i32 : i32 to index
    %c0_32 = arith.constant 0 : index
    %c0_33 = arith.constant 0 : index
    %85 = vector.load %arg12[%84, %c0_32, %c0_33] : memref<8x8x128xf32, #tpu.memory_space<vmem>>, vector<1x8x128xf32>
    %86 = vector.shape_cast %85 : vector<1x8x128xf32> to vector<8x128xf32>
    %87 = vector.shape_cast %83 : vector<8x128xf32> to vector<1x8x128xf32>
    tpu.vector_store %arg12[%84, %c0_32, %c0_33], %87 {strides = array<i32>} : memref<8x8x128xf32, #tpu.memory_space<vmem>>, vector<1x8x128xf32>,
    %88 = arith.subf %78, %53 : vector<8x128xf32>
    %89 = vector.broadcast %81 : vector<8x1xf32> to vector<8x128xf32>
    %90 = arith.mulf %88, %89 : vector<8x128xf32>
    %91 = arith.addf %53, %90 : vector<8x128xf32>
    %92 = arith.subf %76, %57 : vector<8x128xf32>
    %93 = vector.broadcast %81 : vector<8x1xf32> to vector<8x128xf32>
    %94 = arith.mulf %92, %93 : vector<8x128xf32>
    %95 = arith.addf %57, %94 : vector<8x128xf32>
    %c2_i32 = arith.constant 2 : i32
    %96 = arith.index_cast %c2_i32 : i32 to index
    %c0_34 = arith.constant 0 : index
    %c0_35 = arith.constant 0 : index
    %97 = vector.load %arg11[%96, %c0_34, %c0_35] : memref<8x8x512xf32, #tpu.memory_space<vmem>>, vector<1x8x512xf32>
    %98 = vector.shape_cast %97 : vector<1x8x512xf32> to vector<8x512xf32>
    %cst_36 = arith.constant dense<0.000000e+00> : vector<8x512xf32>
    %99 = tpu.matmul %91, %17, %cst_36 {dimension_numbers = #tpu.dot_dimension_numbers<[1], [0], [0], [1], [0, 0, 1, 1], [], []>} : vector<8x128xf32>, vector<128x512xf32>, vector<8x512xf32> -> vector<8x512xf32>
    %100 = arith.addf %98, %99 : vector<8x512xf32>
    %101 = vector.extract_strided_slice %100 {offsets = [0, 0], sizes = [8, 384], strides = [1, 1]} : vector<8x512xf32> to vector<8x384xf32>
    %102 = arith.negf %101 : vector<8x384xf32>
    %103 = math.exp %102 : vector<8x384xf32>
    %cst_37 = arith.constant 1.000000e+00 : f32
    %104 = vector.broadcast %cst_37 : f32 to vector<8x384xf32>
    %105 = arith.addf %104, %103 : vector<8x384xf32>
    %106 = arith.divf %104, %105 : vector<8x384xf32>
    %107 = vector.extract_strided_slice %106 {offsets = [0, 0], sizes = [8, 128], strides = [1, 1]} : vector<8x384xf32> to vector<8x128xf32>
    %108 = vector.extract_strided_slice %106 {offsets = [0, 128], sizes = [8, 128], strides = [1, 1]} : vector<8x384xf32> to vector<8x128xf32>
    %109 = vector.extract_strided_slice %106 {offsets = [0, 256], sizes = [8, 128], strides = [1, 1]} : vector<8x384xf32> to vector<8x128xf32>
    %110 = vector.extract_strided_slice %100 {offsets = [0, 384], sizes = [8, 128], strides = [1, 1]} : vector<8x512xf32> to vector<8x128xf32>
    %111 = math.tanh %110 : vector<8x128xf32>
    %112 = arith.mulf %108, %95 : vector<8x128xf32>
    %113 = arith.mulf %107, %111 : vector<8x128xf32>
    %114 = arith.addf %112, %113 : vector<8x128xf32>
    %115 = math.tanh %114 : vector<8x128xf32>
    %116 = arith.mulf %109, %115 : vector<8x128xf32>
    %117 = arith.index_cast %c2_i32 : i32 to index
    %c0_38 = arith.constant 0 : index
    %c0_39 = arith.constant 0 : index
    %118 = vector.load %arg13[%117, %c0_38, %c0_39] : memref<8x8x1xf32, #tpu.memory_space<vmem>>, vector<1x8x1xf32>
    %119 = vector.shape_cast %118 : vector<1x8x1xf32> to vector<8x1xf32>
    %120 = vector.broadcast %119 : vector<8x1xf32> to vector<8x128xf32>
    %121 = arith.mulf %116, %120 : vector<8x128xf32>
    %122 = arith.index_cast %c2_i32 : i32 to index
    %c0_40 = arith.constant 0 : index
    %c0_41 = arith.constant 0 : index
    %123 = vector.load %arg12[%122, %c0_40, %c0_41] : memref<8x8x128xf32, #tpu.memory_space<vmem>>, vector<1x8x128xf32>
    %124 = vector.shape_cast %123 : vector<1x8x128xf32> to vector<8x128xf32>
    %125 = vector.shape_cast %121 : vector<8x128xf32> to vector<1x8x128xf32>
    tpu.vector_store %arg12[%122, %c0_40, %c0_41], %125 {strides = array<i32>} : memref<8x8x128xf32, #tpu.memory_space<vmem>>, vector<1x8x128xf32>,
    %126 = arith.subf %116, %91 : vector<8x128xf32>
    %127 = vector.broadcast %119 : vector<8x1xf32> to vector<8x128xf32>
    %128 = arith.mulf %126, %127 : vector<8x128xf32>
    %129 = arith.addf %91, %128 : vector<8x128xf32>
    %130 = arith.subf %114, %95 : vector<8x128xf32>
    %131 = vector.broadcast %119 : vector<8x1xf32> to vector<8x128xf32>
    %132 = arith.mulf %130, %131 : vector<8x128xf32>
    %133 = arith.addf %95, %132 : vector<8x128xf32>
    %c3_i32 = arith.constant 3 : i32
    %134 = arith.index_cast %c3_i32 : i32 to index
    %c0_42 = arith.constant 0 : index
    %c0_43 = arith.constant 0 : index
    %135 = vector.load %arg11[%134, %c0_42, %c0_43] : memref<8x8x512xf32, #tpu.memory_space<vmem>>, vector<1x8x512xf32>
    %136 = vector.shape_cast %135 : vector<1x8x512xf32> to vector<8x512xf32>
    %cst_44 = arith.constant dense<0.000000e+00> : vector<8x512xf32>
    %137 = tpu.matmul %129, %17, %cst_44 {dimension_numbers = #tpu.dot_dimension_numbers<[1], [0], [0], [1], [0, 0, 1, 1], [], []>} : vector<8x128xf32>, vector<128x512xf32>, vector<8x512xf32> -> vector<8x512xf32>
    %138 = arith.addf %136, %137 : vector<8x512xf32>
    %139 = vector.extract_strided_slice %138 {offsets = [0, 0], sizes = [8, 384], strides = [1, 1]} : vector<8x512xf32> to vector<8x384xf32>
    %140 = arith.negf %139 : vector<8x384xf32>
    %141 = math.exp %140 : vector<8x384xf32>
    %cst_45 = arith.constant 1.000000e+00 : f32
    %142 = vector.broadcast %cst_45 : f32 to vector<8x384xf32>
    %143 = arith.addf %142, %141 : vector<8x384xf32>
    %144 = arith.divf %142, %143 : vector<8x384xf32>
    %145 = vector.extract_strided_slice %144 {offsets = [0, 0], sizes = [8, 128], strides = [1, 1]} : vector<8x384xf32> to vector<8x128xf32>
    %146 = vector.extract_strided_slice %144 {offsets = [0, 128], sizes = [8, 128], strides = [1, 1]} : vector<8x384xf32> to vector<8x128xf32>
    %147 = vector.extract_strided_slice %144 {offsets = [0, 256], sizes = [8, 128], strides = [1, 1]} : vector<8x384xf32> to vector<8x128xf32>
    %148 = vector.extract_strided_slice %138 {offsets = [0, 384], sizes = [8, 128], strides = [1, 1]} : vector<8x512xf32> to vector<8x128xf32>
    %149 = math.tanh %148 : vector<8x128xf32>
    %150 = arith.mulf %146, %133 : vector<8x128xf32>
    %151 = arith.mulf %145, %149 : vector<8x128xf32>
    %152 = arith.addf %150, %151 : vector<8x128xf32>
    %153 = math.tanh %152 : vector<8x128xf32>
    %154 = arith.mulf %147, %153 : vector<8x128xf32>
    %155 = arith.index_cast %c3_i32 : i32 to index
    %c0_46 = arith.constant 0 : index
    %c0_47 = arith.constant 0 : index
    %156 = vector.load %arg13[%155, %c0_46, %c0_47] : memref<8x8x1xf32, #tpu.memory_space<vmem>>, vector<1x8x1xf32>
    %157 = vector.shape_cast %156 : vector<1x8x1xf32> to vector<8x1xf32>
    %158 = vector.broadcast %157 : vector<8x1xf32> to vector<8x128xf32>
    %159 = arith.mulf %154, %158 : vector<8x128xf32>
    %160 = arith.index_cast %c3_i32 : i32 to index
    %c0_48 = arith.constant 0 : index
    %c0_49 = arith.constant 0 : index
    %161 = vector.load %arg12[%160, %c0_48, %c0_49] : memref<8x8x128xf32, #tpu.memory_space<vmem>>, vector<1x8x128xf32>
    %162 = vector.shape_cast %161 : vector<1x8x128xf32> to vector<8x128xf32>
    %163 = vector.shape_cast %159 : vector<8x128xf32> to vector<1x8x128xf32>
    tpu.vector_store %arg12[%160, %c0_48, %c0_49], %163 {strides = array<i32>} : memref<8x8x128xf32, #tpu.memory_space<vmem>>, vector<1x8x128xf32>,
    %164 = arith.subf %154, %129 : vector<8x128xf32>
    %165 = vector.broadcast %157 : vector<8x1xf32> to vector<8x128xf32>
    %166 = arith.mulf %164, %165 : vector<8x128xf32>
    %167 = arith.addf %129, %166 : vector<8x128xf32>
    %168 = arith.subf %152, %133 : vector<8x128xf32>
    %169 = vector.broadcast %157 : vector<8x1xf32> to vector<8x128xf32>
    %170 = arith.mulf %168, %169 : vector<8x128xf32>
    %171 = arith.addf %133, %170 : vector<8x128xf32>
    %c4_i32 = arith.constant 4 : i32
    %172 = arith.index_cast %c4_i32 : i32 to index
    %c0_50 = arith.constant 0 : index
    %c0_51 = arith.constant 0 : index
    %173 = vector.load %arg11[%172, %c0_50, %c0_51] : memref<8x8x512xf32, #tpu.memory_space<vmem>>, vector<1x8x512xf32>
    %174 = vector.shape_cast %173 : vector<1x8x512xf32> to vector<8x512xf32>
    %cst_52 = arith.constant dense<0.000000e+00> : vector<8x512xf32>
    %175 = tpu.matmul %167, %17, %cst_52 {dimension_numbers = #tpu.dot_dimension_numbers<[1], [0], [0], [1], [0, 0, 1, 1], [], []>} : vector<8x128xf32>, vector<128x512xf32>, vector<8x512xf32> -> vector<8x512xf32>
    %176 = arith.addf %174, %175 : vector<8x512xf32>
    %177 = vector.extract_strided_slice %176 {offsets = [0, 0], sizes = [8, 384], strides = [1, 1]} : vector<8x512xf32> to vector<8x384xf32>
    %178 = arith.negf %177 : vector<8x384xf32>
    %179 = math.exp %178 : vector<8x384xf32>
    %cst_53 = arith.constant 1.000000e+00 : f32
    %180 = vector.broadcast %cst_53 : f32 to vector<8x384xf32>
    %181 = arith.addf %180, %179 : vector<8x384xf32>
    %182 = arith.divf %180, %181 : vector<8x384xf32>
    %183 = vector.extract_strided_slice %182 {offsets = [0, 0], sizes = [8, 128], strides = [1, 1]} : vector<8x384xf32> to vector<8x128xf32>
    %184 = vector.extract_strided_slice %182 {offsets = [0, 128], sizes = [8, 128], strides = [1, 1]} : vector<8x384xf32> to vector<8x128xf32>
    %185 = vector.extract_strided_slice %182 {offsets = [0, 256], sizes = [8, 128], strides = [1, 1]} : vector<8x384xf32> to vector<8x128xf32>
    %186 = vector.extract_strided_slice %176 {offsets = [0, 384], sizes = [8, 128], strides = [1, 1]} : vector<8x512xf32> to vector<8x128xf32>
    %187 = math.tanh %186 : vector<8x128xf32>
    %188 = arith.mulf %184, %171 : vector<8x128xf32>
    %189 = arith.mulf %183, %187 : vector<8x128xf32>
    %190 = arith.addf %188, %189 : vector<8x128xf32>
    %191 = math.tanh %190 : vector<8x128xf32>
    %192 = arith.mulf %185, %191 : vector<8x128xf32>
    %193 = arith.index_cast %c4_i32 : i32 to index
    %c0_54 = arith.constant 0 : index
    %c0_55 = arith.constant 0 : index
    %194 = vector.load %arg13[%193, %c0_54, %c0_55] : memref<8x8x1xf32, #tpu.memory_space<vmem>>, vector<1x8x1xf32>
    %195 = vector.shape_cast %194 : vector<1x8x1xf32> to vector<8x1xf32>
    %196 = vector.broadcast %195 : vector<8x1xf32> to vector<8x128xf32>
    %197 = arith.mulf %192, %196 : vector<8x128xf32>
    %198 = arith.index_cast %c4_i32 : i32 to index
    %c0_56 = arith.constant 0 : index
    %c0_57 = arith.constant 0 : index
    %199 = vector.load %arg12[%198, %c0_56, %c0_57] : memref<8x8x128xf32, #tpu.memory_space<vmem>>, vector<1x8x128xf32>
    %200 = vector.shape_cast %199 : vector<1x8x128xf32> to vector<8x128xf32>
    %201 = vector.shape_cast %197 : vector<8x128xf32> to vector<1x8x128xf32>
    tpu.vector_store %arg12[%198, %c0_56, %c0_57], %201 {strides = array<i32>} : memref<8x8x128xf32, #tpu.memory_space<vmem>>, vector<1x8x128xf32>,
    %202 = arith.subf %192, %167 : vector<8x128xf32>
    %203 = vector.broadcast %195 : vector<8x1xf32> to vector<8x128xf32>
    %204 = arith.mulf %202, %203 : vector<8x128xf32>
    %205 = arith.addf %167, %204 : vector<8x128xf32>
    %206 = arith.subf %190, %171 : vector<8x128xf32>
    %207 = vector.broadcast %195 : vector<8x1xf32> to vector<8x128xf32>
    %208 = arith.mulf %206, %207 : vector<8x128xf32>
    %209 = arith.addf %171, %208 : vector<8x128xf32>
    %c5_i32 = arith.constant 5 : i32
    %210 = arith.index_cast %c5_i32 : i32 to index
    %c0_58 = arith.constant 0 : index
    %c0_59 = arith.constant 0 : index
    %211 = vector.load %arg11[%210, %c0_58, %c0_59] : memref<8x8x512xf32, #tpu.memory_space<vmem>>, vector<1x8x512xf32>
    %212 = vector.shape_cast %211 : vector<1x8x512xf32> to vector<8x512xf32>
    %cst_60 = arith.constant dense<0.000000e+00> : vector<8x512xf32>
    %213 = tpu.matmul %205, %17, %cst_60 {dimension_numbers = #tpu.dot_dimension_numbers<[1], [0], [0], [1], [0, 0, 1, 1], [], []>} : vector<8x128xf32>, vector<128x512xf32>, vector<8x512xf32> -> vector<8x512xf32>
    %214 = arith.addf %212, %213 : vector<8x512xf32>
    %215 = vector.extract_strided_slice %214 {offsets = [0, 0], sizes = [8, 384], strides = [1, 1]} : vector<8x512xf32> to vector<8x384xf32>
    %216 = arith.negf %215 : vector<8x384xf32>
    %217 = math.exp %216 : vector<8x384xf32>
    %cst_61 = arith.constant 1.000000e+00 : f32
    %218 = vector.broadcast %cst_61 : f32 to vector<8x384xf32>
    %219 = arith.addf %218, %217 : vector<8x384xf32>
    %220 = arith.divf %218, %219 : vector<8x384xf32>
    %221 = vector.extract_strided_slice %220 {offsets = [0, 0], sizes = [8, 128], strides = [1, 1]} : vector<8x384xf32> to vector<8x128xf32>
    %222 = vector.extract_strided_slice %220 {offsets = [0, 128], sizes = [8, 128], strides = [1, 1]} : vector<8x384xf32> to vector<8x128xf32>
    %223 = vector.extract_strided_slice %220 {offsets = [0, 256], sizes = [8, 128], strides = [1, 1]} : vector<8x384xf32> to vector<8x128xf32>
    %224 = vector.extract_strided_slice %214 {offsets = [0, 384], sizes = [8, 128], strides = [1, 1]} : vector<8x512xf32> to vector<8x128xf32>
    %225 = math.tanh %224 : vector<8x128xf32>
    %226 = arith.mulf %222, %209 : vector<8x128xf32>
    %227 = arith.mulf %221, %225 : vector<8x128xf32>
    %228 = arith.addf %226, %227 : vector<8x128xf32>
    %229 = math.tanh %228 : vector<8x128xf32>
    %230 = arith.mulf %223, %229 : vector<8x128xf32>
    %231 = arith.index_cast %c5_i32 : i32 to index
    %c0_62 = arith.constant 0 : index
    %c0_63 = arith.constant 0 : index
    %232 = vector.load %arg13[%231, %c0_62, %c0_63] : memref<8x8x1xf32, #tpu.memory_space<vmem>>, vector<1x8x1xf32>
    %233 = vector.shape_cast %232 : vector<1x8x1xf32> to vector<8x1xf32>
    %234 = vector.broadcast %233 : vector<8x1xf32> to vector<8x128xf32>
    %235 = arith.mulf %230, %234 : vector<8x128xf32>
    %236 = arith.index_cast %c5_i32 : i32 to index
    %c0_64 = arith.constant 0 : index
    %c0_65 = arith.constant 0 : index
    %237 = vector.load %arg12[%236, %c0_64, %c0_65] : memref<8x8x128xf32, #tpu.memory_space<vmem>>, vector<1x8x128xf32>
    %238 = vector.shape_cast %237 : vector<1x8x128xf32> to vector<8x128xf32>
    %239 = vector.shape_cast %235 : vector<8x128xf32> to vector<1x8x128xf32>
    tpu.vector_store %arg12[%236, %c0_64, %c0_65], %239 {strides = array<i32>} : memref<8x8x128xf32, #tpu.memory_space<vmem>>, vector<1x8x128xf32>,
    %240 = arith.subf %230, %205 : vector<8x128xf32>
    %241 = vector.broadcast %233 : vector<8x1xf32> to vector<8x128xf32>
    %242 = arith.mulf %240, %241 : vector<8x128xf32>
    %243 = arith.addf %205, %242 : vector<8x128xf32>
    %244 = arith.subf %228, %209 : vector<8x128xf32>
    %245 = vector.broadcast %233 : vector<8x1xf32> to vector<8x128xf32>
    %246 = arith.mulf %244, %245 : vector<8x128xf32>
    %247 = arith.addf %209, %246 : vector<8x128xf32>
    %c6_i32 = arith.constant 6 : i32
    %248 = arith.index_cast %c6_i32 : i32 to index
    %c0_66 = arith.constant 0 : index
    %c0_67 = arith.constant 0 : index
    %249 = vector.load %arg11[%248, %c0_66, %c0_67] : memref<8x8x512xf32, #tpu.memory_space<vmem>>, vector<1x8x512xf32>
    %250 = vector.shape_cast %249 : vector<1x8x512xf32> to vector<8x512xf32>
    %cst_68 = arith.constant dense<0.000000e+00> : vector<8x512xf32>
    %251 = tpu.matmul %243, %17, %cst_68 {dimension_numbers = #tpu.dot_dimension_numbers<[1], [0], [0], [1], [0, 0, 1, 1], [], []>} : vector<8x128xf32>, vector<128x512xf32>, vector<8x512xf32> -> vector<8x512xf32>
    %252 = arith.addf %250, %251 : vector<8x512xf32>
    %253 = vector.extract_strided_slice %252 {offsets = [0, 0], sizes = [8, 384], strides = [1, 1]} : vector<8x512xf32> to vector<8x384xf32>
    %254 = arith.negf %253 : vector<8x384xf32>
    %255 = math.exp %254 : vector<8x384xf32>
    %cst_69 = arith.constant 1.000000e+00 : f32
    %256 = vector.broadcast %cst_69 : f32 to vector<8x384xf32>
    %257 = arith.addf %256, %255 : vector<8x384xf32>
    %258 = arith.divf %256, %257 : vector<8x384xf32>
    %259 = vector.extract_strided_slice %258 {offsets = [0, 0], sizes = [8, 128], strides = [1, 1]} : vector<8x384xf32> to vector<8x128xf32>
    %260 = vector.extract_strided_slice %258 {offsets = [0, 128], sizes = [8, 128], strides = [1, 1]} : vector<8x384xf32> to vector<8x128xf32>
    %261 = vector.extract_strided_slice %258 {offsets = [0, 256], sizes = [8, 128], strides = [1, 1]} : vector<8x384xf32> to vector<8x128xf32>
    %262 = vector.extract_strided_slice %252 {offsets = [0, 384], sizes = [8, 128], strides = [1, 1]} : vector<8x512xf32> to vector<8x128xf32>
    %263 = math.tanh %262 : vector<8x128xf32>
    %264 = arith.mulf %260, %247 : vector<8x128xf32>
    %265 = arith.mulf %259, %263 : vector<8x128xf32>
    %266 = arith.addf %264, %265 : vector<8x128xf32>
    %267 = math.tanh %266 : vector<8x128xf32>
    %268 = arith.mulf %261, %267 : vector<8x128xf32>
    %269 = arith.index_cast %c6_i32 : i32 to index
    %c0_70 = arith.constant 0 : index
    %c0_71 = arith.constant 0 : index
    %270 = vector.load %arg13[%269, %c0_70, %c0_71] : memref<8x8x1xf32, #tpu.memory_space<vmem>>, vector<1x8x1xf32>
    %271 = vector.shape_cast %270 : vector<1x8x1xf32> to vector<8x1xf32>
    %272 = vector.broadcast %271 : vector<8x1xf32> to vector<8x128xf32>
    %273 = arith.mulf %268, %272 : vector<8x128xf32>
    %274 = arith.index_cast %c6_i32 : i32 to index
    %c0_72 = arith.constant 0 : index
    %c0_73 = arith.constant 0 : index
    %275 = vector.load %arg12[%274, %c0_72, %c0_73] : memref<8x8x128xf32, #tpu.memory_space<vmem>>, vector<1x8x128xf32>
    %276 = vector.shape_cast %275 : vector<1x8x128xf32> to vector<8x128xf32>
    %277 = vector.shape_cast %273 : vector<8x128xf32> to vector<1x8x128xf32>
    tpu.vector_store %arg12[%274, %c0_72, %c0_73], %277 {strides = array<i32>} : memref<8x8x128xf32, #tpu.memory_space<vmem>>, vector<1x8x128xf32>,
    %278 = arith.subf %268, %243 : vector<8x128xf32>
    %279 = vector.broadcast %271 : vector<8x1xf32> to vector<8x128xf32>
    %280 = arith.mulf %278, %279 : vector<8x128xf32>
    %281 = arith.addf %243, %280 : vector<8x128xf32>
    %282 = arith.subf %266, %247 : vector<8x128xf32>
    %283 = vector.broadcast %271 : vector<8x1xf32> to vector<8x128xf32>
    %284 = arith.mulf %282, %283 : vector<8x128xf32>
    %285 = arith.addf %247, %284 : vector<8x128xf32>
    %c7_i32 = arith.constant 7 : i32
    %286 = arith.index_cast %c7_i32 : i32 to index
    %c0_74 = arith.constant 0 : index
    %c0_75 = arith.constant 0 : index
    %287 = vector.load %arg11[%286, %c0_74, %c0_75] : memref<8x8x512xf32, #tpu.memory_space<vmem>>, vector<1x8x512xf32>
    %288 = vector.shape_cast %287 : vector<1x8x512xf32> to vector<8x512xf32>
    %cst_76 = arith.constant dense<0.000000e+00> : vector<8x512xf32>
    %289 = tpu.matmul %281, %17, %cst_76 {dimension_numbers = #tpu.dot_dimension_numbers<[1], [0], [0], [1], [0, 0, 1, 1], [], []>} : vector<8x128xf32>, vector<128x512xf32>, vector<8x512xf32> -> vector<8x512xf32>
    %290 = arith.addf %288, %289 : vector<8x512xf32>
    %291 = vector.extract_strided_slice %290 {offsets = [0, 0], sizes = [8, 384], strides = [1, 1]} : vector<8x512xf32> to vector<8x384xf32>
    %292 = arith.negf %291 : vector<8x384xf32>
    %293 = math.exp %292 : vector<8x384xf32>
    %cst_77 = arith.constant 1.000000e+00 : f32
    %294 = vector.broadcast %cst_77 : f32 to vector<8x384xf32>
    %295 = arith.addf %294, %293 : vector<8x384xf32>
    %296 = arith.divf %294, %295 : vector<8x384xf32>
    %297 = vector.extract_strided_slice %296 {offsets = [0, 0], sizes = [8, 128], strides = [1, 1]} : vector<8x384xf32> to vector<8x128xf32>
    %298 = vector.extract_strided_slice %296 {offsets = [0, 128], sizes = [8, 128], strides = [1, 1]} : vector<8x384xf32> to vector<8x128xf32>
    %299 = vector.extract_strided_slice %296 {offsets = [0, 256], sizes = [8, 128], strides = [1, 1]} : vector<8x384xf32> to vector<8x128xf32>
    %300 = vector.extract_strided_slice %290 {offsets = [0, 384], sizes = [8, 128], strides = [1, 1]} : vector<8x512xf32> to vector<8x128xf32>
    %301 = math.tanh %300 : vector<8x128xf32>
    %302 = arith.mulf %298, %285 : vector<8x128xf32>
    %303 = arith.mulf %297, %301 : vector<8x128xf32>
    %304 = arith.addf %302, %303 : vector<8x128xf32>
    %305 = math.tanh %304 : vector<8x128xf32>
    %306 = arith.mulf %299, %305 : vector<8x128xf32>
    %307 = arith.index_cast %c7_i32 : i32 to index
    %c0_78 = arith.constant 0 : index
    %c0_79 = arith.constant 0 : index
    %308 = vector.load %arg13[%307, %c0_78, %c0_79] : memref<8x8x1xf32, #tpu.memory_space<vmem>>, vector<1x8x1xf32>
    %309 = vector.shape_cast %308 : vector<1x8x1xf32> to vector<8x1xf32>
    %310 = vector.broadcast %309 : vector<8x1xf32> to vector<8x128xf32>
    %311 = arith.mulf %306, %310 : vector<8x128xf32>
    %312 = arith.index_cast %c7_i32 : i32 to index
    %c0_80 = arith.constant 0 : index
    %c0_81 = arith.constant 0 : index
    %313 = vector.load %arg12[%312, %c0_80, %c0_81] : memref<8x8x128xf32, #tpu.memory_space<vmem>>, vector<1x8x128xf32>
    %314 = vector.shape_cast %313 : vector<1x8x128xf32> to vector<8x128xf32>
    %315 = vector.shape_cast %311 : vector<8x128xf32> to vector<1x8x128xf32>
    tpu.vector_store %arg12[%312, %c0_80, %c0_81], %315 {strides = array<i32>} : memref<8x8x128xf32, #tpu.memory_space<vmem>>, vector<1x8x128xf32>,
    %316 = arith.subf %306, %281 : vector<8x128xf32>
    %317 = vector.broadcast %309 : vector<8x1xf32> to vector<8x128xf32>
    %318 = arith.mulf %316, %317 : vector<8x128xf32>
    %319 = arith.addf %281, %318 : vector<8x128xf32>
    %320 = arith.subf %304, %285 : vector<8x128xf32>
    %321 = vector.broadcast %309 : vector<8x1xf32> to vector<8x128xf32>
    %322 = arith.mulf %320, %321 : vector<8x128xf32>
    %323 = arith.addf %285, %322 : vector<8x128xf32>
    %c8_i32 = arith.constant 8 : i32
    %c0_82 = arith.constant 0 : index
    %c0_83 = arith.constant 0 : index
    %c0_84 = arith.constant 0 : index
    %324 = vector.load %arg12[%c0_82, %c0_83, %c0_84] : memref<8x8x128xf32, #tpu.memory_space<vmem>>, vector<8x8x128xf32>
    %325 = vector.shape_cast %324 : vector<8x8x128xf32> to vector<64x128xf32>
    %c0_85 = arith.constant 0 : index
    %c0_86 = arith.constant 0 : index
    %c0_87 = arith.constant 0 : index
    %326 = vector.load %arg2[%c0_85, %c0_86, %c0_87] : memref<8x8x8xf32, #tpu.memory_space<vmem>>, vector<8x8x8xf32>
    %327 = vector.shape_cast %326 : vector<8x8x8xf32> to vector<64x8xf32>
    %c0_88 = arith.constant 0 : index
    %c0_89 = arith.constant 0 : index
    %328 = vector.load %arg7[%c0_88, %c0_89] : memref<128x128xf32, #tpu.memory_space<vmem>>, vector<128x128xf32>
    %cst_90 = arith.constant dense<0.000000e+00> : vector<64x128xf32>
    %329 = tpu.matmul %325, %328, %cst_90 {dimension_numbers = #tpu.dot_dimension_numbers<[1], [0], [0], [1], [0, 0, 1, 1], [], []>} : vector<64x128xf32>, vector<128x128xf32>, vector<64x128xf32> -> vector<64x128xf32>
    %c0_91 = arith.constant 0 : index
    %c0_92 = arith.constant 0 : index
    %330 = vector.load %arg8[%c0_91, %c0_92] : memref<8x128xf32, #tpu.memory_space<vmem>>, vector<8x128xf32>
    %cst_93 = arith.constant dense<0.000000e+00> : vector<64x128xf32>
    %331 = tpu.matmul %327, %330, %cst_93 {dimension_numbers = #tpu.dot_dimension_numbers<[1], [0], [0], [1], [0, 0, 1, 1], [], []>} : vector<64x8xf32>, vector<8x128xf32>, vector<64x128xf32> -> vector<64x128xf32>
    %332 = arith.addf %329, %331 : vector<64x128xf32>
    %c0_94 = arith.constant 0 : index
    %c0_95 = arith.constant 0 : index
    %333 = vector.load %arg9[%c0_94, %c0_95] : memref<1x128xf32, #tpu.memory_space<vmem>>, vector<1x128xf32>
    %334 = vector.broadcast %333 : vector<1x128xf32> to vector<64x128xf32>
    %335 = arith.addf %332, %334 : vector<64x128xf32>
    %336 = vector.shape_cast %335 : vector<64x128xf32> to vector<8x8x128xf32>
    %c0_96 = arith.constant 0 : index
    %c0_97 = arith.constant 0 : index
    %c0_98 = arith.constant 0 : index
    %337 = vector.load %arg10[%c0_96, %c0_97, %c0_98] : memref<8x8x128xf32, #tpu.memory_space<vmem>>, vector<8x8x128xf32>
    tpu.vector_store %arg10[%c0_96, %c0_97, %c0_98], %336 {strides = array<i32>} : memref<8x8x128xf32, #tpu.memory_space<vmem>>, vector<8x8x128xf32>,
    return
  }
  func.func @transform_0(%arg0: i32) -> (i32, i32, i32) {
    %c0_i32 = arith.constant 0 : i32
    %c0_i32_0 = arith.constant 0 : i32
    %c0_i32_1 = arith.constant 0 : i32
    return %c0_i32, %arg0, %c0_i32_0 : i32, i32, i32
  }
  func.func @transform_1(%arg0: i32) -> (i32, i32, i32) {
    %c0_i32 = arith.constant 0 : i32
    %c0_i32_0 = arith.constant 0 : i32
    %c0_i32_1 = arith.constant 0 : i32
    return %c0_i32, %arg0, %c0_i32_0 : i32, i32, i32
  }
  func.func @transform_2(%arg0: i32) -> (i32, i32) {
    %c0_i32 = arith.constant 0 : i32
    %c0_i32_0 = arith.constant 0 : i32
    return %arg0, %c0_i32 : i32, i32
  }
  func.func @transform_3(%arg0: i32) -> (i32, i32) {
    %c0_i32 = arith.constant 0 : i32
    %c0_i32_0 = arith.constant 0 : i32
    %c0_i32_1 = arith.constant 0 : i32
    return %c0_i32, %c0_i32_0 : i32, i32
  }
  func.func @transform_4(%arg0: i32) -> (i32, i32) {
    %c0_i32 = arith.constant 0 : i32
    %c0_i32_0 = arith.constant 0 : i32
    %c0_i32_1 = arith.constant 0 : i32
    return %c0_i32, %c0_i32_0 : i32, i32
  }
  func.func @transform_5(%arg0: i32) -> (i32, i32) {
    %c0_i32 = arith.constant 0 : i32
    %c0_i32_0 = arith.constant 0 : i32
    %c0_i32_1 = arith.constant 0 : i32
    return %c0_i32, %c0_i32_0 : i32, i32
  }
  func.func @transform_6(%arg0: i32) -> (i32, i32) {
    %c0_i32 = arith.constant 0 : i32
    %c0_i32_0 = arith.constant 0 : i32
    %c0_i32_1 = arith.constant 0 : i32
    return %c0_i32, %c0_i32_0 : i32, i32
  }
  func.func @transform_7(%arg0: i32) -> (i32, i32) {
    %c0_i32 = arith.constant 0 : i32
    %c0_i32_0 = arith.constant 0 : i32
    %c0_i32_1 = arith.constant 0 : i32
    return %c0_i32, %c0_i32_0 : i32, i32
  }
  func.func @transform_8(%arg0: i32) -> (i32, i32) {
    %c0_i32 = arith.constant 0 : i32
    %c0_i32_0 = arith.constant 0 : i32
    %c0_i32_1 = arith.constant 0 : i32
    return %c0_i32, %c0_i32_0 : i32, i32
  }
  func.func @transform_9(%arg0: i32) -> (i32, i32, i32) {
    %c0_i32 = arith.constant 0 : i32
    %c0_i32_0 = arith.constant 0 : i32
    %c0_i32_1 = arith.constant 0 : i32
    return %c0_i32, %arg0, %c0_i32_0 : i32, i32, i32
  }
}

</mosaic_0001>

<bundles_post_ra>
// kernel: lstm_cat_cat_forward.1
= control target key start
LH: loop header
LB: loop body
LE: loop exit
PB: predicated region body
PF: predicated region fallthrough
CT: control target
= control target key end

     0   :  { %vm95_vm0 = vcmask 1041408   ;;  %vm3188_vm1 = vmmov 1   ;;  %v3189_v3 = vmov 0.0   ;;  %v3190_v7 = vmov 0   ;;  %s4200_s3 = inlined_call_operand.vmem [shape: f32[10,512], index: 3, kind: input, shape index: {}]   ;;  %s4201_s4 = inlined_call_operand.vmem [shape: f32[128,512], index: 4, kind: input, shape index: {}]   ;;  %s4202_s0 = inlined_call_operand.vmem [shape: f32[8,8,10], index: 0, kind: input, shape index: {}]   ;;  %s4203_s2 = inlined_call_operand.vmem [shape: s32[8,1], index: 2, kind: input, shape index: {}]   ;;  %s4204_s5 = inlined_call_operand.vmem [shape: f32[1,512], index: 5, kind: input, shape index: {}]   ;;  %s4205_s7 = inlined_call_operand.vmem [shape: f32[8,128], index: 7, kind: input, shape index: {}]   ;;  %s4206_s6 = inlined_call_operand.vmem [shape: f32[128,128], index: 6, kind: input, shape index: {}]   ;;  %s4207_s1 = inlined_call_operand.vmem [shape: f32[8,8,8], index: 1, kind: input, shape index: {}]   ;;  %s4208_s8 = inlined_call_operand.vmem [shape: f32[1,128], index: 8, kind: input, shape index: {}]   ;;  %s4209_s9 = inlined_call_operand.vmem [shape: f32[8,8,128], index: 9, kind: output, shape index: {}]  }
   0x1   :  { %v43_v0 = vld [vmem:[%s4200_s3 + $0x18] sm:$0xff]  ;;  %vm3247_vm2 = vmpackc.low %vm95_vm0, %vm3188_vm1  ;;  %285 = vmatprep.mubr.f32.mxu1 %v3189_v3  ;;  %172 = vmatprep.mubr.f32.mxu0 %v3189_v3  ;;  %v42_v5 = vld [vmem:[%s4200_s3 + $0x10] sm:$0xff]  ;;  %vm70_vm3 = vcmask 80896   ;;  %vm391_vm4 = vcmask 7168   ;;  %vm2013_vm13 = vcmask 64512  }
   0x2   :  { %v47_v1 = vld [vmem:[%s4200_s3 + $0x38] sm:$0x3]  ;;  %v46_v6 = vld [vmem:[%s4200_s3 + $0x30] sm:$0x3]  ;;  %3058 = vset.pattern.permute.xlu0 %v3190_v7  ;;  %3059 = vset.pattern.permute.xlu1 %v3190_v7  ;;  %v401_v9 = vld [vmem:[%s4201_s4 + $0x8] sm:$0xff] }
   0x3   :  { %v2433_v4 = vpack.c.bf16 %v47_v1, %v43_v0  ;;  %v2436_v8 = vpack.c.bf16 %v46_v6, %v42_v5  ;;  %v405_v10 = vld [vmem:[%s4201_s4 + $0x28] sm:$0xff]  ;;  %v400_v11 = vld [vmem:[%s4201_s4] sm:$0xff]  ;;  %v3335_v30 = vld [vmem:[%s4202_s0 + $0x10] sm:$0xff] }
   0x4   :  { %v3270_v12 = vpack.c.bf16 %v405_v10, %v401_v9  ;;  %v404_v13 = vld [vmem:[%s4201_s4 + $0x20] sm:$0xff]  ;;  %v409_v14 = vld [vmem:[%s4201_s4 + $0x48] sm:$0xff]  ;;  %v3373_v43 = vld [vmem:[%s4202_s0 + $0x18] sm:$0xff] }
   0x5   :  { %2435 = vmatprep.subr.msk.bf16.mxu1 %vm3247_vm2, %v2433_v4  ;;  %v32_v15 = vld [vmem:[%s4202_s0] sm:$0xff]  ;;  %v3283_v16 = vpack.c.bf16 %v404_v13, %v400_v11  ;;  %v413_v17 = vld [vmem:[%s4201_s4 + $0x68] sm:$0xff]  ;;  %v3474_v4 = vld [vmem:[%s4202_s0 + $0x30] sm:$0xff] }
   0x6   :  { %2438 = vmatpush1.bf16.msk.msra.mxu1 %vm3247_vm2, %v2436_v8  ;;  %v3289_v18 = vpack.c.bf16 %v413_v17, %v409_v14  ;;  %v408_v19 = vld [vmem:[%s4201_s4 + $0x40] sm:$0xff]  ;;  %v417_v21 = vld [vmem:[%s4201_s4 + $0x88] sm:$0xff]  ;;  %v403_v11 = vld [vmem:[%s4201_s4 + $0x18] sm:$0xff] }
   0x7   :  { %2440 = vmatprep.subr.bf16.mxu1 %v3270_v12  ;;  %v412_v20 = vld [vmem:[%s4201_s4 + $0x60] sm:$0xff]  ;;  %v421_v22 = vld [vmem:[%s4201_s4 + $0xa8] sm:$0xff]  ;;  %v407_v13 = vld [vmem:[%s4201_s4 + $0x38] sm:$0xff] }
   0x8   :  { %v3309_v23 = vld [vmem:[%s4202_s0 + $0x8] sm:$0xff]  ;;  %v3311_v24 = vpack.c.bf16 %v412_v20, %v408_v19  ;;  %v3314_v25 = vpack.c.bf16 %v421_v22, %v417_v21  ;;  %v416_v26 = vld [vmem:[%s4201_s4 + $0x80] sm:$0xff]  ;;  %v3513_v14 = vld [vmem:[%s4202_s0 + $0x38] sm:$0xff]  ;;  %v3518_v17 = vpack.c.bf16 %v407_v13, %v403_v11 }
   0x9   :  { %2287 = vmatmul.mubr.msk.f32.vlgmr.msra.gmra.mrb[0].mxu1 %vm70_vm3, %v32_v15  ;;  %v420_v27 = vld [vmem:[%s4201_s4 + $0xa0] sm:$0xff]  ;;  %v425_v28 = vld [vmem:[%s4201_s4 + $0xc8] sm:$0xff]  ;;  %v402_v19 = vld [vmem:[%s4201_s4 + $0x10] sm:$0xff] }
   0xa   :  { %2442 = vmatpush1.bf16.msra.mxu1 %v3283_v16  ;;  %291 = vmatprep.mubr.f32.mxu1 %v3189_v3  ;;  %v429_v29 = vld [vmem:[%s4201_s4 + $0xe8] sm:$0xff]  ;;  %v3337_v31 = vpack.c.bf16 %v420_v27, %v416_v26  ;;  %v424_v32 = vld [vmem:[%s4201_s4 + $0xc0] sm:$0xff]  ;;  %v406_v20 = vld [vmem:[%s4201_s4 + $0x30] sm:$0xff] }
   0xb   :  { %2444 = vmatprep.subr.bf16.mxu1 %v3289_v18  ;;  %v428_v33 = vld [vmem:[%s4201_s4 + $0xe0] sm:$0xff]  ;;  %v3346_v34 = vpack.c.bf16 %v429_v29, %v425_v28  ;;  %v433_v35 = vld [vmem:[%s4201_s4 + $0x108] sm:$0xff]  ;;  %v411_v21 = vld [vmem:[%s4201_s4 + $0x58] sm:$0xff] }
   0xc   :  { %v41_v36 = vld [vmem:[%s4200_s3 + $0x8] sm:$0xff]  ;;  %v40_v40 = vld [vmem:[%s4200_s3] sm:$0xff]  ;;  %v3375_v44 = vpack.c.bf16 %v428_v33, %v424_v32  ;;  %v415_v22 = vld [vmem:[%s4201_s4 + $0x78] sm:$0xff] }
   0xd   :  { %2288 = vmatmul.mubr.msk.f32.gmra.mrb[2].mxu1 %vm70_vm3, %v3309_v23  ;;  %v45_v37 = vld [vmem:[%s4200_s3 + $0x28] sm:$0x3]  ;;  %v44_v41 = vld [vmem:[%s4200_s3 + $0x20] sm:$0x3]  ;;  %v3544_v26 = vpack.c.bf16 %v415_v22, %v411_v21  ;;  %v410_v27 = vld [vmem:[%s4201_s4 + $0x50] sm:$0xff] }
   0xe   :  { %2446 = vmatpush1.bf16.msra.mxu1 %v3311_v24  ;;  %297 = vmatprep.mubr.f32.mxu1 %v3189_v3  ;;  %v437_v38 = vld [vmem:[%s4201_s4 + $0x128] sm:$0xff]  ;;  %v2427_v39 = vpack.c.bf16 %v45_v37, %v41_v36  ;;  %v2430_v42 = vpack.c.bf16 %v44_v41, %v40_v40  ;;  %v432_v46 = vld [vmem:[%s4201_s4 + $0x100] sm:$0xff]  ;;  %v414_v28 = vld [vmem:[%s4201_s4 + $0x70] sm:$0xff] }
   0xf   :  { %2448 = vmatprep.subr.bf16.mxu1 %v3314_v25  ;;  %v3378_v45 = vpack.c.bf16 %v437_v38, %v433_v35  ;;  %v436_v47 = vld [vmem:[%s4201_s4 + $0x120] sm:$0xff]  ;;  %v441_v48 = vld [vmem:[%s4201_s4 + $0x148] sm:$0xff]  ;;  %v423_v32 = vld [vmem:[%s4201_s4 + $0xb8] sm:$0xff]  ;;  %v3564_v35 = vpack.c.bf16 %v414_v28, %v410_v27  ;;  %v50_v27 = vlaneseq }
  0x10   :  { %2429 = vmatprep.subr.msk.bf16.mxu0 %vm3247_vm2, %v2427_v39  ;;  %v445_v49 = vld [vmem:[%s4201_s4 + $0x168] sm:$0xff]  ;;  %v3404_v50 = vld [vmem:[%s4202_s0 + $0x20] sm:$0xff]  ;;  %v3406_v51 = vpack.c.bf16 %v436_v47, %v432_v46  ;;  %v418_v37 = vld [vmem:[%s4201_s4 + $0x90] sm:$0xff] }
  0x11   :  { %2289 = vmatmul.mubr.msk.f32.gmra.mrb[4].mxu1 %vm70_vm3, %v3335_v30  ;;  %2432 = vmatpush1.bf16.msk.msra.mxu0 %vm3247_vm2, %v2430_v42  ;;  %v3409_v52 = vpack.c.bf16 %v445_v49, %v441_v48  ;;  %v440_v53 = vld [vmem:[%s4201_s4 + $0x140] sm:$0xff]  ;;  %v449_v55 = vld [vmem:[%s4201_s4 + $0x188] sm:$0xff]  ;;  %v422_v38 = vld [vmem:[%s4201_s4 + $0xb0] sm:$0xff] }
  0x12   :  { %2450 = vmatpush1.bf16.msra.mxu1 %v3337_v31  ;;  %303 = vmatprep.mubr.f32.mxu1 %v3189_v3  ;;  %v444_v54 = vld [vmem:[%s4201_s4 + $0x160] sm:$0xff]  ;;  %v453_v56 = vld [vmem:[%s4201_s4 + $0x1a8] sm:$0xff]  ;;  %v427_v39 = vld [vmem:[%s4201_s4 + $0xd8] sm:$0xff]  ;;  %v3588_v42 = vpack.c.bf16 %v422_v38, %v418_v37 }
  0x13   :  { %2452 = vmatprep.subr.bf16.mxu1 %v3346_v34  ;;  %2504 = vmatprep.subr.bf16.mxu0 %v3270_v12  ;;  %v3431_v57 = vld [vmem:[%s4202_s0 + $0x28] sm:$0xff]  ;;  %v448_v58 = vld [vmem:[%s4201_s4 + $0x180] sm:$0xff]  ;;  %v3439_v59 = vpack.c.bf16 %v444_v54, %v440_v53  ;;  %v3451_v63 = vpack.c.bf16 %v453_v56, %v449_v55  ;;  %v431_v40 = vld [vmem:[%s4201_s4 + $0xf8] sm:$0xff] }
  0x14   :  { %2277 = vmatmul.mubr.msk.f32.vlgmr.msra.gmra.mrb[0].mxu0 %vm70_vm3, %v32_v15  ;;  %v452_v60 = vld [vmem:[%s4201_s4 + $0x1a0] sm:$0xff]  ;;  %v457_v61 = vld [vmem:[%s4201_s4 + $0x1c8] sm:$0xff]  ;;  %v426_v46 = vld [vmem:[%s4201_s4 + $0xd0] sm:$0xff] }
  0x15   :  { %2290 = vmatmul.mubr.msk.f32.gmra.mrb[6].mxu1 %vm70_vm3, %v3373_v43  ;;  %2506 = vmatpush1.bf16.msra.mxu0 %v3283_v16  ;;  %v461_v62 = vld [vmem:[%s4201_s4 + $0x1e8] sm:$0xff]  ;;  %v3459_v0 = vpack.c.bf16 %v452_v60, %v448_v58  ;;  %v3466_v2 = vld [vmem:[%s4203_s2] sm:$0xff]  ;;  %v430_v47 = vld [vmem:[%s4201_s4 + $0xf0] sm:$0xff] }
  0x16   :  { %2454 = vmatpush1.bf16.msra.mxu1 %v3375_v44  ;;  %309 = vmatprep.mubr.f32.mxu1 %v3189_v3  ;;  %v3461_v1 = vpack.c.bf16 %v461_v62, %v457_v61  ;;  %vm367_vm5 = vcmp.gt.s32.totalorder %v3466_v2, 0  ;;  %vm368_vm6 = vcmp.gt.s32.totalorder %v3466_v2, 1  ;;  %vm371_vm7 = vcmp.gt.s32.totalorder %v3466_v2, 4  ;;  %v456_v5 = vld [vmem:[%s4201_s4 + $0x1c0] sm:$0xff]  ;;  %v435_v48 = vld [vmem:[%s4201_s4 + $0x118] sm:$0xff]  ;;  %v434_v55 = vld [vmem:[%s4201_s4 + $0x110] sm:$0xff] }
  0x17   :  { %2456 = vmatprep.subr.bf16.mxu1 %v3378_v45  ;;  %178 = vmatprep.mubr.f32.mxu0 %v3189_v3  ;;  %vm373_vm8 = vcmp.gt.s32.totalorder %v3466_v2, 6  ;;  %v460_v6 = vld [vmem:[%s4201_s4 + $0x1e0] sm:$0xff]  ;;  %v2295_v7 = vsel %vm367_vm5, 1.0, %v3189_v3  ;;  %v2296_v8 = vsel %vm368_vm6, 1.0, %v3189_v3  ;;  %v2299_v9 = vsel %vm371_vm7, 1.0, %v3189_v3  ;;  %v439_v49 = vld [vmem:[%s4201_s4 + $0x138] sm:$0xff] }
  0x18   :  { %2508 = vmatprep.subr.bf16.mxu0 %v3289_v18  ;;  %2278 = vmatmul.mubr.msk.f32.gmra.mrb[2].mxu0 %vm70_vm3, %v3309_v23  ;;  %v2301_v10 = vsel %vm373_vm8, 1.0, %v3189_v3  ;;  %392 = vst.msk [vmem:[#allocation4] sm:$0xff] %vm391_vm4, %v2295_v7  ;;  %393 = vst.msk [vmem:[#allocation4 + $0x8] sm:$0xff] %vm391_vm4, %v2296_v8  ;;  %v3515_v15 = vpack.c.bf16 %v460_v6, %v456_v5  ;;  %v3541_v23 = vpack.c.bf16 %v406_v20, %v402_v19  ;;  %v438_v56 = vld [vmem:[%s4201_s4 + $0x130] sm:$0xff]  ;;  %v447_v58 = vld [vmem:[%s4201_s4 + $0x178] sm:$0xff] }
  0x19   :  { %2291 = vmatmul.mubr.msk.f32.gmra.mrb[8].mxu1 %vm70_vm3, %v3404_v50  ;;  %2510 = vmatpush1.bf16.msra.mxu0 %v3311_v24  ;;  %396 = vst.msk [vmem:[#allocation4 + $0x20] sm:$0xff] %vm391_vm4, %v2299_v9  ;;  %398 = vst.msk [vmem:[#allocation4 + $0x30] sm:$0xff] %vm391_vm4, %v2301_v10  ;;  %v3611_v53 = vpack.c.bf16 %v430_v47, %v426_v46  ;;  %v3615_v54 = vpack.c.bf16 %v439_v49, %v435_v48  ;;  %v442_v62 = vld [vmem:[%s4201_s4 + $0x150] sm:$0xff]  ;;  %v451_v5 = vld [vmem:[%s4201_s4 + $0x198] sm:$0xff]  ;;  %vm369_vm9 = vcmp.gt.s32.totalorder %v3466_v2, 2 }
  0x1a   :  { %2458 = vmatpush1.bf16.msra.mxu1 %v3406_v51  ;;  %315 = vmatprep.mubr.f32.mxu1 %v3189_v3  ;;  %v3634_v60 = vpack.c.bf16 %v438_v56, %v434_v55  ;;  %v455_v6 = vld [vmem:[%s4201_s4 + $0x1b8] sm:$0xff]  ;;  %v450_v9 = vld [vmem:[%s4201_s4 + $0x190] sm:$0xff]  ;;  %vm370_vm10 = vcmp.gt.s32.totalorder %v3466_v2, 3  ;;  %vm372_vm11 = vcmp.gt.s32.totalorder %v3466_v2, 5  ;;  %vm374_vm12 = vcmp.gt.s32.totalorder %v3466_v2, 7 }
  0x1b   :  { %2460 = vmatprep.subr.bf16.mxu1 %v3409_v52  ;;  %184 = vmatprep.mubr.f32.mxu0 %v3189_v3  ;;  %v3656_v8 = vpack.c.bf16 %v455_v6, %v451_v5  ;;  %v454_v10 = vld [vmem:[%s4201_s4 + $0x1b0] sm:$0xff]  ;;  %v459_v11 = vld [vmem:[%s4201_s4 + $0x1d8] sm:$0xff] }
  0x1c   :  { %2512 = vmatprep.subr.bf16.mxu0 %v3314_v25  ;;  %2279 = vmatmul.mubr.msk.f32.gmra.mrb[4].mxu0 %vm70_vm3, %v3335_v30  ;;  %v419_v30 = vld [vmem:[%s4201_s4 + $0x98] sm:$0xff]  ;;  %v458_v20 = vld [vmem:[%s4201_s4 + $0x1d0] sm:$0xff] }
  0x1d   :  { %2292 = vmatmul.mubr.msk.f32.gmra.mrb[10].mxu1 %vm70_vm3, %v3431_v57  ;;  %2514 = vmatpush1.bf16.msra.mxu0 %v3337_v31  ;;  %v3568_v36 = vpack.c.bf16 %v423_v32, %v419_v30  ;;  %v463_v13 = vld [vmem:[%s4201_s4 + $0x1f8] sm:$0xff]  ;;  %v462_v21 = vld [vmem:[%s4201_s4 + $0x1f0] sm:$0xff]  ;;  %v51_v30 = vshrl.u32 %v50_v27, 7 }
  0x1e   :  { %2462 = vmatpush1.bf16.msra.mxu1 %v3439_v59  ;;  %321 = vmatprep.mubr.f32.mxu1 %v3189_v3  ;;  %v3674_v19 = vpack.c.bf16 %v463_v13, %v459_v11  ;;  %v3683_v22 = vpack.c.bf16 %v462_v21, %v458_v20 }
  0x1f   :  { %2464 = vmatprep.subr.bf16.mxu1 %v3451_v63  ;;  %190 = vmatprep.mubr.f32.mxu0 %v3189_v3  ;;  %v638_v29 = vld [vmem:[#allocation4] sm:$0xff]  ;;  %v825_v33 = vld [vmem:[#allocation4 + $0x8] sm:$0xff]  ;;  %v52_v32 = vsub.s32 0, %v51_v30  ;;  %v56_v37 = vsub.s32 1, %v51_v30  ;;  %v60_v56 = vsub.s32 2, %v51_v30 }
  0x20   :  { %2516 = vmatprep.subr.bf16.mxu0 %v3346_v34  ;;  %2280 = vmatmul.mubr.msk.f32.gmra.mrb[6].mxu0 %vm70_vm3, %v3373_v43  ;;  %v1398_v41 = vld [vmem:[#allocation4 + $0x20] sm:$0xff]  ;;  %v3592_v43 = vpack.c.bf16 %v431_v40, %v427_v39 }
  0x21   :  { %2293 = vmatmul.mubr.msk.f32.gmra.mrb[12].mxu1 %vm70_vm3, %v3474_v4  ;;  %2518 = vmatpush1.bf16.msra.mxu0 %v3375_v44 }
  0x22   :  { %2466 = vmatpush1.bf16.msra.mxu1 %v3459_v0  ;;  %327 = vmatprep.mubr.f32.mxu1 %v3189_v3 }
  0x23   :  { %2468 = vmatprep.subr.bf16.mxu1 %v3461_v1  ;;  %196 = vmatprep.mubr.f32.mxu0 %v3189_v3 }
  0x24   :  { %2520 = vmatprep.subr.bf16.mxu0 %v3378_v45  ;;  %2281 = vmatmul.mubr.msk.f32.gmra.mrb[8].mxu0 %vm70_vm3, %v3404_v50  ;;  %v1780_v50 = vld [vmem:[#allocation4 + $0x30] sm:$0xff] }
  0x25   :  { %2294 = vmatmul.mubr.msk.f32.gmra.mrb[14].mxu1 %vm70_vm3, %v3513_v14  ;;  %641 = vperm.xlu0 %3058, %v638_v29  }
  0x26   :  { %2470 = vmatpush1.bf16.msra.mxu1 %v3515_v15  ;;  %532 = vmatprep.mubr.f32.mxu1 %v3189_v3 }
  0x27   :  { %2472 = vmatprep.subr.bf16.mxu1 %v3518_v17  ;;  %2522 = vmatpush1.bf16.msra.mxu0 %v3406_v51 }
  0x28   :  { %202 = vmatprep.mubr.f32.mxu0 %v3189_v3  ;;  %2524 = vmatprep.subr.bf16.mxu0 %v3409_v52 }
  0x29   :  { %533 = vmatmul.mubr.f32.vlgmr.msra.gmra.mrb[16].mxu1 %v3189_v3  ;;  %828 = vperm.xlu0 %3058, %v825_v33   ;;  %v48_v33 = vld [vmem:[%s4204_s5] sm:$0xf] }
  0x2a   :  { %2474 = vmatpush1.bf16.msra.mxu1 %v3541_v23  ;;  %603 = vmatprep.mubr.f32.mxu1 %v3189_v3  ;;  %v3709_v38 = vrot.slane %v48_v33, %v52_v32  ;;  %v3711_v39 = vrot.slane %v48_v33, %v56_v37 }
  0x2b   :  { %2476 = vmatprep.subr.bf16.mxu1 %v3544_v26  ;;  %2282 = vmatmul.mubr.msk.f32.gmra.mrb[10].mxu0 %vm70_vm3, %v3431_v57  ;;  %v443_v57 = vld [vmem:[%s4201_s4 + $0x158] sm:$0xff] }
  0x2c   :  { %2526 = vmatpush1.bf16.msra.mxu0 %v3439_v59  ;;  %208 = vmatprep.mubr.f32.mxu0 %v3189_v3  ;;  %v3638_v61 = vpack.c.bf16 %v447_v58, %v443_v57  ;;  %v64_v57 = vsub.s32 3, %v51_v30 }
  0x2d   :  { %2528 = vmatprep.subr.bf16.mxu0 %v3451_v63  ;;  %1401 = vperm.xlu0 %3058, %v1398_v41  }
  0x2e   :  { %2478 = vmatpush1.bf16.msra.mxu1 %v3564_v35  ;;  %v3717_v6 = vrot.slane %v48_v33, %v64_v57  ;;  %v2302_v57 = vsel %vm374_vm12, 1.0, %v3189_v3 }
  0x2f   :  { %2480 = vmatprep.subr.bf16.mxu1 %v3568_v36  ;;  %2283 = vmatmul.mubr.msk.f32.gmra.mrb[12].mxu0 %vm70_vm3, %v3474_v4  ;;  %v446_v4 = vld [vmem:[%s4201_s4 + $0x170] sm:$0xff]  ;;  %399 = vst.msk [vmem:[#allocation4 + $0x38] sm:$0xff] %vm391_vm4, %v2302_v57 }
  0x30   :  { %2530 = vmatpush1.bf16.msra.mxu0 %v3459_v0  ;;  %214 = vmatprep.mubr.f32.mxu0 %v3189_v3  ;;  %v3653_v7 = vpack.c.bf16 %v446_v4, %v442_v62  ;;  %v3715_v4 = vrot.slane %v48_v33, %v60_v56  ;;  %v2300_v56 = vsel %vm372_vm11, 1.0, %v3189_v3 }
  0x31   :  { %2532 = vmatprep.subr.bf16.mxu0 %v3461_v1  ;;  %1783 = vperm.xlu0 %3058, %v1780_v50   ;;  %397 = vst.msk [vmem:[#allocation4 + $0x28] sm:$0xff] %vm391_vm4, %v2300_v56 }
  0x32   :  { %2482 = vmatpush1.bf16.msra.mxu1 %v3588_v42 }
  0x33   :  { %2484 = vmatprep.subr.bf16.mxu1 %v3592_v43  ;;  %2284 = vmatmul.mubr.msk.f32.gmra.mrb[14].mxu0 %vm70_vm3, %v3513_v14  ;;  %v3671_v14 = vpack.c.bf16 %v454_v10, %v450_v9 }
  0x34   :  { %2534 = vmatpush1.bf16.msra.mxu0 %v3515_v15  ;;  %718 = vmatprep.mubr.f32.mxu0 %v3189_v3 }
  0x35   :  { %2568 = vmatprep.subr.bf16.mxu0 %v3270_v12 }
  0x36   :  { %2486 = vmatpush1.bf16.msra.mxu1 %v3611_v53 }
  0x37   :  { %2488 = vmatprep.subr.bf16.mxu1 %v3615_v54 }
  0x38   :  { %v1589_v2 = vld [vmem:[#allocation4 + $0x28] sm:$0xff] }
  0x3a   :  { %2490 = vmatpush1.bf16.msra.mxu1 %v3634_v60 }
  0x3b   :  { %2492 = vmatprep.subr.bf16.mxu1 %v3638_v61 }
  0x3e   :  { %2494 = vmatpush1.bf16.msra.mxu1 %v3653_v7 }
  0x3f   :  { %2496 = vmatprep.subr.bf16.mxu1 %v3656_v8 }
  0x42   :  { %2498 = vmatpush1.bf16.msra.mxu1 %v3671_v14 }
  0x43   :  { %2500 = vmatprep.subr.bf16.mxu1 %v3674_v19 }
  0x46   :  { %2502 = vmatpush1.bf16.msra.mxu1 %v3683_v22 }
  0x47   :  { %2536 = vmatprep.subr.bf16.mxu1 %v3518_v17 }
  0x49   :  { %604 = vmatmul.mubr.f32.vlgmr.msra.gmra.mrb[0].mxu1 %v3189_v3 }
  0x4a   :  { %2538 = vmatpush1.bf16.msra.mxu1 %v3541_v23  ;;  %789 = vmatprep.mubr.f32.mxu1 %v3189_v3 }
  0x4b   :  { %2540 = vmatprep.subr.bf16.mxu1 %v3544_v26 }
  0x4e   :  { %2542 = vmatpush1.bf16.msra.mxu1 %v3564_v35 }
  0x4f   :  { %2544 = vmatprep.subr.bf16.mxu1 %v3568_v36 }
  0x52   :  { %2546 = vmatpush1.bf16.msra.mxu1 %v3588_v42 }
  0x53   :  { %2548 = vmatprep.subr.bf16.mxu1 %v3592_v43 }
  0x56   :  { %2550 = vmatpush1.bf16.msra.mxu1 %v3611_v53 }
  0x57   :  { %2552 = vmatprep.subr.bf16.mxu1 %v3615_v54 }
  0x5a   :  { %2554 = vmatpush1.bf16.msra.mxu1 %v3634_v60 }
  0x5b   :  { %2556 = vmatprep.subr.bf16.mxu1 %v3638_v61 }
  0x5e   :  { %2558 = vmatpush1.bf16.msra.mxu1 %v3653_v7 }
  0x5f   :  { %2560 = vmatprep.subr.bf16.mxu1 %v3656_v8 }
  0x62   :  { %2562 = vmatpush1.bf16.msra.mxu1 %v3671_v14 }
  0x63   :  { %2564 = vmatprep.subr.bf16.mxu1 %v3674_v19 }
  0x66   :  { %2566 = vmatpush1.bf16.msra.mxu1 %v3683_v22 }
  0x67   :  { %2600 = vmatprep.subr.bf16.mxu1 %v3518_v17 }
  0xe7   :  { %v174_v28 = vpop.f32.mrb[0].mxu0 }
  0xe8   :  { %v176_v29 = vpop.f32.mrb[1].mxu0  ;;  %v175_v40 = vadd.f32 %v174_v28, %v3709_v38 }
  0xe9   :  { %v177_v41 = vadd.f32 %v176_v29, %v3711_v39 }
  0xfc   :  { %v534_v46 = vpop.f32.mrb[16].mxu1 }
  0xfd   :  { %v610_v47 = vadd.f32 %v534_v46, %v175_v40  ;;  %v536_v48 = vpop.f32.mrb[17].mxu1 }
  0xfe   :  { %v611_v49 = vadd.f32 %v536_v48, %v177_v41  ;;  %v3724_v48 = vpop.permute.xlu0 %641 }
  0xff   :  { %v2303_v55 = vmul.f32 -1.442695, %v610_v47 }
 0x100   :  { %v2304_v50 = vmul.f32 -1.442695, %v611_v49 }
 0x102   :  { %3060 = vpow2.f32 %v2304_v50  ;;  %v2297_v50 = vsel %vm369_vm9, 1.0, %v3189_v3 }
 0x103   :  { %3062 = vpow2.f32 %v2303_v55  ;;  %v2298_v55 = vsel %vm370_vm10, 1.0, %v3189_v3  ;;  %394 = vst.msk [vmem:[#allocation4 + $0x10] sm:$0xff] %vm391_vm4, %v2297_v50 }
 0x104   :  { %395 = vst.msk [vmem:[#allocation4 + $0x18] sm:$0xff] %vm391_vm4, %v2298_v55 }
 0x10c   :  { %v3061_v58 = vpop.eup %3060 }
 0x10d   :  { %v3063_v62 = vpop.eup %3062  ;;  %v624_v5 = vadd.f32 1.0, %v3061_v58  ;;  %v1016_v58 = vld [vmem:[#allocation4 + $0x10] sm:$0xff] }
 0x10e   :  { %v623_v9 = vadd.f32 1.0, %v3063_v62  ;;  %1019 = vperm.xlu1 %3059, %v1016_v58   ;;  %v1207_v62 = vld [vmem:[#allocation4 + $0x18] sm:$0xff] }
 0x10f   :  { %3064 = vrcp.f32 %v624_v5  ;;  %v1971_v5 = vld [vmem:[#allocation4 + $0x38] sm:$0xff] }
 0x110   :  { %3066 = vrcp.f32 %v623_v9 }
 0x112   :  { %1210 = vperm.xlu1 %3059, %v1207_v62  }
 0x116   :  { %1592 = vperm.xlu1 %3059, %v1589_v2  }
 0x119   :  { %v3065_v27 = vpop.eup %3064 }
 0x11a   :  { %v3067_v28 = vpop.eup %3066  ;;  %v633_v32 = vmul.f32 0.0, %v3065_v27  ;;  %1974 = vperm.xlu1 %3059, %v1971_v5  }
 0x11c   :  { %v605_v10 = vpop.f32.mrb[0].mxu1 }
 0x11d   :  { %v3001_v11 = vadd.f32 %v605_v10, %v3715_v4  ;;  %v607_v13 = vpop.f32.mrb[1].mxu1 }
 0x11e   :  { %v3002_v20 = vadd.f32 %v607_v13, %v3717_v6 }
 0x11f   :  { %v2305_v21 = vmul.f32 -1.442695, %v3001_v11 }
 0x120   :  { %3068 = vtanh.f32 %v3002_v20 }
 0x121   :  { %3070 = vpow2.f32 %v2305_v21 }
 0x12a   :  { %v3069_v29 = vpop.eup %3068 }
 0x12b   :  { %v3071_v30 = vpop.eup %3070  ;;  %v634_v37 = vmul.f32 %v3069_v29, %v3067_v28 }
 0x12c   :  { %v625_v33 = vadd.f32 1.0, %v3071_v30 }
 0x12d   :  { %v3721_v40 = vadd.f32 %v634_v37, %v633_v32 }
 0x12e   :  { %3072 = vrcp.f32 %v625_v33 }
 0x12f   :  { %3074 = vtanh.f32 %v3721_v40  ;;  %v647_v56 = vmul.f32 %v3724_v48, %v3721_v40 }
 0x138   :  { %v3073_v41 = vpop.eup %3072 }
 0x139   :  { %v3075_v46 = vpop.eup %3074 }
 0x13a   :  { %v637_v47 = vmul.f32 %v3075_v46, %v3073_v41 }
 0x13c   :  { %v3727_v49 = vmul.f32 %v3724_v48, %v637_v47 }
 0x13e   :  { %719 = vmatmul.mubr.f32.vlgmr.msra.gmra.mrb[2].mxu0 %v3727_v49  ;;  %790 = vmatmul.mubr.f32.vlgmr.msra.gmra.mrb[2].mxu1 %v3727_v49 }
 0x13f   :  { %2570 = vmatpush1.bf16.msra.mxu0 %v3283_v16  ;;  %2602 = vmatpush1.bf16.msra.mxu1 %v3541_v23 }
 0x140   :  { %2572 = vmatprep.subr.bf16.mxu0 %v3289_v18  ;;  %2604 = vmatprep.subr.bf16.mxu1 %v3544_v26 }
 0x141   :  { %909 = vmatprep.mubr.f32.mxu0 %v3189_v3  ;;  %980 = vmatprep.mubr.f32.mxu1 %v3189_v3 }
 0x143   :  { %2574 = vmatpush1.bf16.msra.mxu0 %v3311_v24  ;;  %2606 = vmatpush1.bf16.msra.mxu1 %v3564_v35 }
 0x144   :  { %2576 = vmatprep.subr.bf16.mxu0 %v3314_v25  ;;  %2608 = vmatprep.subr.bf16.mxu1 %v3568_v36 }
 0x147   :  { %2578 = vmatpush1.bf16.msra.mxu0 %v3337_v31  ;;  %2610 = vmatpush1.bf16.msra.mxu1 %v3588_v42 }
 0x148   :  { %2580 = vmatprep.subr.bf16.mxu0 %v3346_v34  ;;  %2612 = vmatprep.subr.bf16.mxu1 %v3592_v43 }
 0x14b   :  { %2582 = vmatpush1.bf16.msra.mxu0 %v3375_v44  ;;  %2614 = vmatpush1.bf16.msra.mxu1 %v3611_v53 }
 0x14c   :  { %2584 = vmatprep.subr.bf16.mxu0 %v3378_v45  ;;  %2616 = vmatprep.subr.bf16.mxu1 %v3615_v54 }
 0x14f   :  { %2586 = vmatpush1.bf16.msra.mxu0 %v3406_v51  ;;  %2618 = vmatpush1.bf16.msra.mxu1 %v3634_v60 }
 0x150   :  { %2588 = vmatprep.subr.bf16.mxu0 %v3409_v52  ;;  %2620 = vmatprep.subr.bf16.mxu1 %v3638_v61 }
 0x153   :  { %2590 = vmatpush1.bf16.msra.mxu0 %v3439_v59  ;;  %2622 = vmatpush1.bf16.msra.mxu1 %v3653_v7 }
 0x154   :  { %2592 = vmatprep.subr.bf16.mxu0 %v3451_v63  ;;  %2624 = vmatprep.subr.bf16.mxu1 %v3656_v8 }
 0x157   :  { %2594 = vmatpush1.bf16.msra.mxu0 %v3459_v0  ;;  %2626 = vmatpush1.bf16.msra.mxu1 %v3671_v14 }
 0x158   :  { %2596 = vmatprep.subr.bf16.mxu0 %v3461_v1  ;;  %2628 = vmatprep.subr.bf16.mxu1 %v3674_v19 }
 0x15b   :  { %2598 = vmatpush1.bf16.msra.mxu0 %v3515_v15  ;;  %2630 = vmatpush1.bf16.msra.mxu1 %v3683_v22 }
 0x15c   :  { %2632 = vmatprep.subr.bf16.mxu0 %v3270_v12  ;;  %2664 = vmatprep.subr.bf16.mxu1 %v3518_v17 }
 0x211   :  { %v720_v9 = vpop.f32.mrb[2].mxu0  ;;  %v791_v10 = vpop.f32.mrb[2].mxu1 }
 0x212   :  { %v2987_v11 = vadd.f32 %v720_v9, %v3709_v38  ;;  %v722_v13 = vpop.f32.mrb[3].mxu0  ;;  %v793_v20 = vpop.f32.mrb[3].mxu1  ;;  %v3003_v29 = vadd.f32 %v791_v10, %v3715_v4 }
 0x213   :  { %v2988_v21 = vadd.f32 %v722_v13, %v3711_v39  ;;  %v3004_v30 = vadd.f32 %v793_v20, %v3717_v6  ;;  %v3783_v10 = vpop.permute.xlu0 %828 }
 0x214   :  { %v2306_v27 = vmul.f32 -1.442695, %v2987_v11  ;;  %v2308_v32 = vmul.f32 -1.442695, %v3003_v29 }
 0x215   :  { %v2307_v28 = vmul.f32 -1.442695, %v2988_v21 }
 0x216   :  { %3076 = vpow2.f32 %v2306_v27 }
 0x217   :  { %3078 = vpow2.f32 %v2307_v28 }
 0x218   :  { %3080 = vtanh.f32 %v3004_v30 }
 0x219   :  { %3082 = vpow2.f32 %v2308_v32 }
 0x220   :  { %v3077_v37 = vpop.eup %3076 }
 0x221   :  { %v809_v33 = vadd.f32 1.0, %v3077_v37  ;;  %v3079_v41 = vpop.eup %3078 }
 0x222   :  { %v810_v46 = vadd.f32 1.0, %v3079_v41  ;;  %v3081_v47 = vpop.eup %3080 }
 0x223   :  { %3084 = vrcp.f32 %v809_v33  ;;  %v3083_v50 = vpop.eup %3082 }
 0x224   :  { %3086 = vrcp.f32 %v810_v46  ;;  %v811_v62 = vadd.f32 1.0, %v3083_v50 }
 0x226   :  { %3088 = vrcp.f32 %v811_v62 }
 0x22d   :  { %v3085_v55 = vpop.eup %3084 }
 0x22e   :  { %v820_v57 = vmul.f32 %v3085_v55, %v3081_v47  ;;  %v3087_v58 = vpop.eup %3086 }
 0x22f   :  { %v819_v2 = vmul.f32 %v3087_v58, %v647_v56 }
 0x230   :  { %v3089_v20 = vpop.eup %3088 }
 0x231   :  { %v821_v5 = vadd.f32 %v820_v57, %v819_v2 }
 0x233   :  { %3090 = vtanh.f32 %v821_v5  ;;  %v837_v9 = vsub.f32 %v821_v5, %v647_v56 }
 0x235   :  { %v838_v11 = vmul.f32 %v837_v9, %v3783_v10 }
 0x237   :  { %v3786_v13 = vadd.f32 %v838_v11, %v647_v56 }
 0x23d   :  { %v3091_v21 = vpop.eup %3090 }
 0x23e   :  { %v3788_v27 = vmul.f32 %v3091_v21, %v3089_v20 }
 0x240   :  { %v834_v40 = vsub.f32 %v3788_v27, %v3727_v49 }
 0x242   :  { %v835_v48 = vmul.f32 %v834_v40, %v3783_v10 }
 0x244   :  { %v3794_v28 = vadd.f32 %v835_v48, %v3727_v49 }
 0x246   :  { %910 = vmatmul.mubr.f32.vlgmr.msra.gmra.mrb[4].mxu0 %v3794_v28  ;;  %981 = vmatmul.mubr.f32.vlgmr.msra.gmra.mrb[4].mxu1 %v3794_v28 }
 0x247   :  { %2634 = vmatpush1.bf16.msra.mxu0 %v3283_v16  ;;  %2666 = vmatpush1.bf16.msra.mxu1 %v3541_v23 }
 0x248   :  { %2636 = vmatprep.subr.bf16.mxu0 %v3289_v18  ;;  %2668 = vmatprep.subr.bf16.mxu1 %v3544_v26 }
 0x249   :  { %1100 = vmatprep.mubr.f32.mxu0 %v3189_v3  ;;  %1171 = vmatprep.mubr.f32.mxu1 %v3189_v3 }
 0x24b   :  { %2638 = vmatpush1.bf16.msra.mxu0 %v3311_v24  ;;  %2670 = vmatpush1.bf16.msra.mxu1 %v3564_v35 }
 0x24c   :  { %2640 = vmatprep.subr.bf16.mxu0 %v3314_v25  ;;  %2672 = vmatprep.subr.bf16.mxu1 %v3568_v36 }
 0x24f   :  { %2642 = vmatpush1.bf16.msra.mxu0 %v3337_v31  ;;  %2674 = vmatpush1.bf16.msra.mxu1 %v3588_v42 }
 0x250   :  { %2644 = vmatprep.subr.bf16.mxu0 %v3346_v34  ;;  %2676 = vmatprep.subr.bf16.mxu1 %v3592_v43 }
 0x253   :  { %2646 = vmatpush1.bf16.msra.mxu0 %v3375_v44  ;;  %2678 = vmatpush1.bf16.msra.mxu1 %v3611_v53 }
 0x254   :  { %2648 = vmatprep.subr.bf16.mxu0 %v3378_v45  ;;  %2680 = vmatprep.subr.bf16.mxu1 %v3615_v54 }
 0x257   :  { %2650 = vmatpush1.bf16.msra.mxu0 %v3406_v51  ;;  %2682 = vmatpush1.bf16.msra.mxu1 %v3634_v60 }
 0x258   :  { %2652 = vmatprep.subr.bf16.mxu0 %v3409_v52  ;;  %2684 = vmatprep.subr.bf16.mxu1 %v3638_v61 }
 0x25b   :  { %2654 = vmatpush1.bf16.msra.mxu0 %v3439_v59  ;;  %2686 = vmatpush1.bf16.msra.mxu1 %v3653_v7 }
 0x25c   :  { %2656 = vmatprep.subr.bf16.mxu0 %v3451_v63  ;;  %2688 = vmatprep.subr.bf16.mxu1 %v3656_v8 }
 0x25f   :  { %2658 = vmatpush1.bf16.msra.mxu0 %v3459_v0  ;;  %2690 = vmatpush1.bf16.msra.mxu1 %v3671_v14 }
 0x260   :  { %2660 = vmatprep.subr.bf16.mxu0 %v3461_v1  ;;  %2692 = vmatprep.subr.bf16.mxu1 %v3674_v19 }
 0x263   :  { %2662 = vmatpush1.bf16.msra.mxu0 %v3515_v15  ;;  %2694 = vmatpush1.bf16.msra.mxu1 %v3683_v22 }
 0x264   :  { %2696 = vmatprep.subr.bf16.mxu0 %v3270_v12  ;;  %2728 = vmatprep.subr.bf16.mxu1 %v3518_v17 }
 0x319   :  { %v911_v29 = vpop.f32.mrb[4].mxu0  ;;  %v982_v30 = vpop.f32.mrb[4].mxu1 }
 0x31a   :  { %v2989_v32 = vadd.f32 %v911_v29, %v3709_v38  ;;  %v913_v37 = vpop.f32.mrb[5].mxu0  ;;  %v984_v33 = vpop.f32.mrb[5].mxu1  ;;  %v3005_v50 = vadd.f32 %v982_v30, %v3715_v4 }
 0x31b   :  { %v2990_v41 = vadd.f32 %v913_v37, %v3711_v39  ;;  %v3006_v55 = vadd.f32 %v984_v33, %v3717_v6  ;;  %v3837_v30 = vpop.permute.xlu1 %1019 }
 0x31c   :  { %v2309_v46 = vmul.f32 -1.442695, %v2989_v32  ;;  %v2311_v56 = vmul.f32 -1.442695, %v3005_v50 }
 0x31d   :  { %v2310_v47 = vmul.f32 -1.442695, %v2990_v41 }
 0x31e   :  { %3092 = vpow2.f32 %v2309_v46 }
 0x31f   :  { %3094 = vpow2.f32 %v2310_v47 }
 0x320   :  { %3096 = vtanh.f32 %v3006_v55 }
 0x321   :  { %3098 = vpow2.f32 %v2311_v56 }
 0x328   :  { %v3093_v57 = vpop.eup %3092 }
 0x329   :  { %v1000_v58 = vadd.f32 1.0, %v3093_v57  ;;  %v3095_v62 = vpop.eup %3094 }
 0x32a   :  { %v1001_v2 = vadd.f32 1.0, %v3095_v62  ;;  %v3097_v5 = vpop.eup %3096 }
 0x32b   :  { %3100 = vrcp.f32 %v1000_v58  ;;  %v3099_v9 = vpop.eup %3098 }
 0x32c   :  { %3102 = vrcp.f32 %v1001_v2  ;;  %v1002_v40 = vadd.f32 1.0, %v3099_v9 }
 0x32e   :  { %3104 = vrcp.f32 %v1002_v40 }
 0x335   :  { %v3101_v11 = vpop.eup %3100 }
 0x336   :  { %v1011_v20 = vmul.f32 %v3101_v11, %v3097_v5  ;;  %v3103_v21 = vpop.eup %3102 }
 0x337   :  { %v1010_v48 = vmul.f32 %v3103_v21, %v3786_v13 }
 0x338   :  { %v3105_v41 = vpop.eup %3104 }
 0x339   :  { %v1012_v29 = vadd.f32 %v1011_v20, %v1010_v48 }
 0x33b   :  { %3106 = vtanh.f32 %v1012_v29  ;;  %v1028_v32 = vsub.f32 %v1012_v29, %v3786_v13 }
 0x33d   :  { %v1029_v37 = vmul.f32 %v1028_v32, %v3837_v30 }
 0x33f   :  { %v3842_v33 = vadd.f32 %v1029_v37, %v3786_v13 }
 0x345   :  { %v3107_v46 = vpop.eup %3106 }
 0x346   :  { %v3844_v47 = vmul.f32 %v3107_v46, %v3105_v41 }
 0x348   :  { %v1025_v50 = vsub.f32 %v3844_v47, %v3794_v28 }
 0x34a   :  { %v1026_v55 = vmul.f32 %v1025_v50, %v3837_v30 }
 0x34c   :  { %v3850_v56 = vadd.f32 %v1026_v55, %v3794_v28 }
 0x34e   :  { %1101 = vmatmul.mubr.f32.vlgmr.msra.gmra.mrb[6].mxu0 %v3850_v56  ;;  %1172 = vmatmul.mubr.f32.vlgmr.msra.gmra.mrb[6].mxu1 %v3850_v56 }
 0x34f   :  { %2698 = vmatpush1.bf16.msra.mxu0 %v3283_v16  ;;  %2730 = vmatpush1.bf16.msra.mxu1 %v3541_v23 }
 0x350   :  { %2700 = vmatprep.subr.bf16.mxu0 %v3289_v18  ;;  %2732 = vmatprep.subr.bf16.mxu1 %v3544_v26 }
 0x351   :  { %1291 = vmatprep.mubr.f32.mxu0 %v3189_v3  ;;  %1362 = vmatprep.mubr.f32.mxu1 %v3189_v3 }
 0x353   :  { %2702 = vmatpush1.bf16.msra.mxu0 %v3311_v24  ;;  %2734 = vmatpush1.bf16.msra.mxu1 %v3564_v35 }
 0x354   :  { %2704 = vmatprep.subr.bf16.mxu0 %v3314_v25  ;;  %2736 = vmatprep.subr.bf16.mxu1 %v3568_v36 }
 0x357   :  { %2706 = vmatpush1.bf16.msra.mxu0 %v3337_v31  ;;  %2738 = vmatpush1.bf16.msra.mxu1 %v3588_v42 }
 0x358   :  { %2708 = vmatprep.subr.bf16.mxu0 %v3346_v34  ;;  %2740 = vmatprep.subr.bf16.mxu1 %v3592_v43 }
 0x35b   :  { %2710 = vmatpush1.bf16.msra.mxu0 %v3375_v44  ;;  %2742 = vmatpush1.bf16.msra.mxu1 %v3611_v53 }
 0x35c   :  { %2712 = vmatprep.subr.bf16.mxu0 %v3378_v45  ;;  %2744 = vmatprep.subr.bf16.mxu1 %v3615_v54 }
 0x35f   :  { %2714 = vmatpush1.bf16.msra.mxu0 %v3406_v51  ;;  %2746 = vmatpush1.bf16.msra.mxu1 %v3634_v60 }
 0x360   :  { %2716 = vmatprep.subr.bf16.mxu0 %v3409_v52  ;;  %2748 = vmatprep.subr.bf16.mxu1 %v3638_v61 }
 0x363   :  { %2718 = vmatpush1.bf16.msra.mxu0 %v3439_v59  ;;  %2750 = vmatpush1.bf16.msra.mxu1 %v3653_v7 }
 0x364   :  { %2720 = vmatprep.subr.bf16.mxu0 %v3451_v63  ;;  %2752 = vmatprep.subr.bf16.mxu1 %v3656_v8 }
 0x367   :  { %2722 = vmatpush1.bf16.msra.mxu0 %v3459_v0  ;;  %2754 = vmatpush1.bf16.msra.mxu1 %v3671_v14 }
 0x368   :  { %2724 = vmatprep.subr.bf16.mxu0 %v3461_v1  ;;  %2756 = vmatprep.subr.bf16.mxu1 %v3674_v19 }
 0x36b   :  { %2726 = vmatpush1.bf16.msra.mxu0 %v3515_v15  ;;  %2758 = vmatpush1.bf16.msra.mxu1 %v3683_v22 }
 0x36c   :  { %2760 = vmatprep.subr.bf16.mxu0 %v3270_v12  ;;  %2792 = vmatprep.subr.bf16.mxu1 %v3518_v17 }
 0x421   :  { %v1102_v13 = vpop.f32.mrb[6].mxu0  ;;  %v1173_v28 = vpop.f32.mrb[6].mxu1 }
 0x422   :  { %v2991_v57 = vadd.f32 %v1102_v13, %v3709_v38  ;;  %v1104_v58 = vpop.f32.mrb[7].mxu0  ;;  %v1175_v62 = vpop.f32.mrb[7].mxu1  ;;  %v3007_v11 = vadd.f32 %v1173_v28, %v3715_v4 }
 0x423   :  { %v2992_v2 = vadd.f32 %v1104_v58, %v3711_v39  ;;  %v3008_v20 = vadd.f32 %v1175_v62, %v3717_v6  ;;  %v3894_v62 = vpop.permute.xlu1 %1210 }
 0x424   :  { %v2312_v5 = vmul.f32 -1.442695, %v2991_v57  ;;  %v2314_v21 = vmul.f32 -1.442695, %v3007_v11 }
 0x425   :  { %v2313_v9 = vmul.f32 -1.442695, %v2992_v2 }
 0x426   :  { %3108 = vpow2.f32 %v2312_v5 }
 0x427   :  { %3110 = vpow2.f32 %v2313_v9 }
 0x428   :  { %3112 = vtanh.f32 %v3008_v20 }
 0x429   :  { %3114 = vpow2.f32 %v2314_v21 }
 0x430   :  { %v3109_v40 = vpop.eup %3108 }
 0x431   :  { %v1191_v48 = vadd.f32 1.0, %v3109_v40  ;;  %v3111_v29 = vpop.eup %3110 }
 0x432   :  { %v1192_v32 = vadd.f32 1.0, %v3111_v29  ;;  %v3113_v37 = vpop.eup %3112 }
 0x433   :  { %3116 = vrcp.f32 %v1191_v48  ;;  %v3115_v41 = vpop.eup %3114 }
 0x434   :  { %3118 = vrcp.f32 %v1192_v32  ;;  %v1193_v13 = vadd.f32 1.0, %v3115_v41 }
 0x436   :  { %3120 = vrcp.f32 %v1193_v13 }
 0x43d   :  { %v3117_v46 = vpop.eup %3116 }
 0x43e   :  { %v1202_v50 = vmul.f32 %v3117_v46, %v3113_v37  ;;  %v3119_v55 = vpop.eup %3118 }
 0x43f   :  { %v1201_v57 = vmul.f32 %v3119_v55, %v3842_v33 }
 0x440   :  { %v3121_v9 = vpop.eup %3120 }
 0x441   :  { %v1203_v28 = vadd.f32 %v1202_v50, %v1201_v57 }
 0x443   :  { %3122 = vtanh.f32 %v1203_v28  ;;  %v1219_v58 = vsub.f32 %v1203_v28, %v3842_v33 }
 0x445   :  { %v1220_v2 = vmul.f32 %v1219_v58, %v3894_v62 }
 0x447   :  { %v3898_v5 = vadd.f32 %v1220_v2, %v3842_v33 }
 0x44d   :  { %v3123_v11 = vpop.eup %3122 }
 0x44e   :  { %v3900_v20 = vmul.f32 %v3123_v11, %v3121_v9 }
 0x450   :  { %v1216_v21 = vsub.f32 %v3900_v20, %v3850_v56 }
 0x452   :  { %v1217_v40 = vmul.f32 %v1216_v21, %v3894_v62 }
 0x454   :  { %v3906_v48 = vadd.f32 %v1217_v40, %v3850_v56 }
 0x456   :  { %1292 = vmatmul.mubr.f32.vlgmr.msra.gmra.mrb[8].mxu0 %v3906_v48  ;;  %1363 = vmatmul.mubr.f32.vlgmr.msra.gmra.mrb[8].mxu1 %v3906_v48 }
 0x457   :  { %2762 = vmatpush1.bf16.msra.mxu0 %v3283_v16  ;;  %2794 = vmatpush1.bf16.msra.mxu1 %v3541_v23 }
 0x458   :  { %2764 = vmatprep.subr.bf16.mxu0 %v3289_v18  ;;  %2796 = vmatprep.subr.bf16.mxu1 %v3544_v26 }
 0x459   :  { %1482 = vmatprep.mubr.f32.mxu0 %v3189_v3  ;;  %1553 = vmatprep.mubr.f32.mxu1 %v3189_v3 }
 0x45b   :  { %2766 = vmatpush1.bf16.msra.mxu0 %v3311_v24  ;;  %2798 = vmatpush1.bf16.msra.mxu1 %v3564_v35 }
 0x45c   :  { %2768 = vmatprep.subr.bf16.mxu0 %v3314_v25  ;;  %2800 = vmatprep.subr.bf16.mxu1 %v3568_v36 }
 0x45f   :  { %2770 = vmatpush1.bf16.msra.mxu0 %v3337_v31  ;;  %2802 = vmatpush1.bf16.msra.mxu1 %v3588_v42 }
 0x460   :  { %2772 = vmatprep.subr.bf16.mxu0 %v3346_v34  ;;  %2804 = vmatprep.subr.bf16.mxu1 %v3592_v43 }
 0x463   :  { %2774 = vmatpush1.bf16.msra.mxu0 %v3375_v44  ;;  %2806 = vmatpush1.bf16.msra.mxu1 %v3611_v53 }
 0x464   :  { %2776 = vmatprep.subr.bf16.mxu0 %v3378_v45  ;;  %2808 = vmatprep.subr.bf16.mxu1 %v3615_v54 }
 0x467   :  { %2778 = vmatpush1.bf16.msra.mxu0 %v3406_v51  ;;  %2810 = vmatpush1.bf16.msra.mxu1 %v3634_v60 }
 0x468   :  { %2780 = vmatprep.subr.bf16.mxu0 %v3409_v52  ;;  %2812 = vmatprep.subr.bf16.mxu1 %v3638_v61 }
 0x46b   :  { %2782 = vmatpush1.bf16.msra.mxu0 %v3439_v59  ;;  %2814 = vmatpush1.bf16.msra.mxu1 %v3653_v7 }
 0x46c   :  { %2784 = vmatprep.subr.bf16.mxu0 %v3451_v63  ;;  %2816 = vmatprep.subr.bf16.mxu1 %v3656_v8 }
 0x46f   :  { %2786 = vmatpush1.bf16.msra.mxu0 %v3459_v0  ;;  %2818 = vmatpush1.bf16.msra.mxu1 %v3671_v14 }
 0x470   :  { %2788 = vmatprep.subr.bf16.mxu0 %v3461_v1  ;;  %2820 = vmatprep.subr.bf16.mxu1 %v3674_v19 }
 0x473   :  { %2790 = vmatpush1.bf16.msra.mxu0 %v3515_v15  ;;  %2822 = vmatpush1.bf16.msra.mxu1 %v3683_v22 }
 0x474   :  { %2824 = vmatprep.subr.bf16.mxu0 %v3270_v12  ;;  %2856 = vmatprep.subr.bf16.mxu1 %v3518_v17 }
 0x529   :  { %v1293_v33 = vpop.f32.mrb[8].mxu0  ;;  %v1364_v56 = vpop.f32.mrb[8].mxu1 }
 0x52a   :  { %v2993_v29 = vadd.f32 %v1293_v33, %v3709_v38  ;;  %v1295_v32 = vpop.f32.mrb[9].mxu0  ;;  %v1366_v37 = vpop.f32.mrb[9].mxu1  ;;  %v3009_v55 = vadd.f32 %v1364_v56, %v3715_v4 }
 0x52b   :  { %v2994_v41 = vadd.f32 %v1295_v32, %v3711_v39  ;;  %v3010_v13 = vadd.f32 %v1366_v37, %v3717_v6 }
 0x52c   :  { %v2315_v46 = vmul.f32 -1.442695, %v2993_v29  ;;  %v2317_v57 = vmul.f32 -1.442695, %v3009_v55 }
 0x52d   :  { %v2316_v50 = vmul.f32 -1.442695, %v2994_v41 }
 0x52e   :  { %3124 = vpow2.f32 %v2315_v46  ;;  %v3950_v46 = vpop.permute.xlu0 %1401 }
 0x52f   :  { %3126 = vpow2.f32 %v2316_v50 }
 0x530   :  { %3128 = vtanh.f32 %v3010_v13 }
 0x531   :  { %3130 = vpow2.f32 %v2317_v57 }
 0x538   :  { %v3125_v28 = vpop.eup %3124 }
 0x539   :  { %v1382_v58 = vadd.f32 1.0, %v3125_v28  ;;  %v3127_v2 = vpop.eup %3126 }
 0x53a   :  { %v1383_v9 = vadd.f32 1.0, %v3127_v2  ;;  %v3129_v11 = vpop.eup %3128 }
 0x53b   :  { %3132 = vrcp.f32 %v1382_v58  ;;  %v3131_v21 = vpop.eup %3130 }
 0x53c   :  { %3134 = vrcp.f32 %v1383_v9  ;;  %v1384_v32 = vadd.f32 1.0, %v3131_v21 }
 0x53e   :  { %3136 = vrcp.f32 %v1384_v32 }
 0x545   :  { %v3133_v40 = vpop.eup %3132 }
 0x546   :  { %v1393_v33 = vmul.f32 %v3133_v40, %v3129_v11  ;;  %v3135_v29 = vpop.eup %3134 }
 0x547   :  { %v1392_v41 = vmul.f32 %v3135_v29, %v3898_v5 }
 0x548   :  { %v3137_v13 = vpop.eup %3136 }
 0x549   :  { %v1394_v56 = vadd.f32 %v1393_v33, %v1392_v41 }
 0x54b   :  { %3138 = vtanh.f32 %v1394_v56  ;;  %v1410_v37 = vsub.f32 %v1394_v56, %v3898_v5 }
 0x54d   :  { %v1411_v50 = vmul.f32 %v1410_v37, %v3950_v46 }
 0x54f   :  { %v3954_v55 = vadd.f32 %v1411_v50, %v3898_v5 }
 0x555   :  { %v3139_v57 = vpop.eup %3138 }
 0x556   :  { %v3956_v28 = vmul.f32 %v3139_v57, %v3137_v13 }
 0x558   :  { %v1407_v58 = vsub.f32 %v3956_v28, %v3906_v48 }
 0x55a   :  { %v1408_v2 = vmul.f32 %v1407_v58, %v3950_v46 }
 0x55c   :  { %v3962_v9 = vadd.f32 %v1408_v2, %v3906_v48 }
 0x55e   :  { %1483 = vmatmul.mubr.f32.vlgmr.msra.gmra.mrb[10].mxu0 %v3962_v9  ;;  %1554 = vmatmul.mubr.f32.vlgmr.msra.gmra.mrb[10].mxu1 %v3962_v9 }
 0x55f   :  { %2826 = vmatpush1.bf16.msra.mxu0 %v3283_v16  ;;  %2858 = vmatpush1.bf16.msra.mxu1 %v3541_v23 }
 0x560   :  { %2828 = vmatprep.subr.bf16.mxu0 %v3289_v18  ;;  %2860 = vmatprep.subr.bf16.mxu1 %v3544_v26 }
 0x561   :  { %1673 = vmatprep.mubr.f32.mxu0 %v3189_v3  ;;  %1744 = vmatprep.mubr.f32.mxu1 %v3189_v3 }
 0x563   :  { %2830 = vmatpush1.bf16.msra.mxu0 %v3311_v24  ;;  %2862 = vmatpush1.bf16.msra.mxu1 %v3564_v35 }
 0x564   :  { %2832 = vmatprep.subr.bf16.mxu0 %v3314_v25  ;;  %2864 = vmatprep.subr.bf16.mxu1 %v3568_v36 }
 0x567   :  { %2834 = vmatpush1.bf16.msra.mxu0 %v3337_v31  ;;  %2866 = vmatpush1.bf16.msra.mxu1 %v3588_v42 }
 0x568   :  { %2836 = vmatprep.subr.bf16.mxu0 %v3346_v34  ;;  %2868 = vmatprep.subr.bf16.mxu1 %v3592_v43 }
 0x56b   :  { %2838 = vmatpush1.bf16.msra.mxu0 %v3375_v44  ;;  %2870 = vmatpush1.bf16.msra.mxu1 %v3611_v53 }
 0x56c   :  { %2840 = vmatprep.subr.bf16.mxu0 %v3378_v45  ;;  %2872 = vmatprep.subr.bf16.mxu1 %v3615_v54 }
 0x56f   :  { %2842 = vmatpush1.bf16.msra.mxu0 %v3406_v51  ;;  %2874 = vmatpush1.bf16.msra.mxu1 %v3634_v60 }
 0x570   :  { %2844 = vmatprep.subr.bf16.mxu0 %v3409_v52  ;;  %2876 = vmatprep.subr.bf16.mxu1 %v3638_v61 }
 0x573   :  { %2846 = vmatpush1.bf16.msra.mxu0 %v3439_v59  ;;  %2878 = vmatpush1.bf16.msra.mxu1 %v3653_v7 }
 0x574   :  { %2848 = vmatprep.subr.bf16.mxu0 %v3451_v63  ;;  %2880 = vmatprep.subr.bf16.mxu1 %v3656_v8 }
 0x577   :  { %2850 = vmatpush1.bf16.msra.mxu0 %v3459_v0  ;;  %2882 = vmatpush1.bf16.msra.mxu1 %v3671_v14 }
 0x578   :  { %2852 = vmatprep.subr.bf16.mxu0 %v3461_v1  ;;  %2884 = vmatprep.subr.bf16.mxu1 %v3674_v19 }
 0x57b   :  { %2854 = vmatpush1.bf16.msra.mxu0 %v3515_v15  ;;  %2886 = vmatpush1.bf16.msra.mxu1 %v3683_v22 }
 0x57c   :  { %2888 = vmatprep.subr.bf16.mxu0 %v3270_v12  ;;  %2920 = vmatprep.subr.bf16.mxu1 %v3518_v17 }
 0x631   :  { %v1484_v5 = vpop.f32.mrb[10].mxu0  ;;  %v1555_v48 = vpop.f32.mrb[10].mxu1 }
 0x632   :  { %v2995_v11 = vadd.f32 %v1484_v5, %v3709_v38  ;;  %v1486_v21 = vpop.f32.mrb[11].mxu0  ;;  %v1557_v40 = vpop.f32.mrb[11].mxu1  ;;  %v3011_v41 = vadd.f32 %v1555_v48, %v3715_v4 }
 0x633   :  { %v2996_v33 = vadd.f32 %v1486_v21, %v3711_v39  ;;  %v3012_v56 = vadd.f32 %v1557_v40, %v3717_v6 }
 0x634   :  { %v2318_v29 = vmul.f32 -1.442695, %v2995_v11  ;;  %v2320_v37 = vmul.f32 -1.442695, %v3011_v41 }
 0x635   :  { %v2319_v32 = vmul.f32 -1.442695, %v2996_v33 }
 0x636   :  { %3140 = vpow2.f32 %v2318_v29  ;;  %v4006_v29 = vpop.permute.xlu1 %1592 }
 0x637   :  { %3142 = vpow2.f32 %v2319_v32 }
 0x638   :  { %3144 = vtanh.f32 %v3012_v56 }
 0x639   :  { %3146 = vpow2.f32 %v2320_v37 }
 0x640   :  { %v3141_v12 = vpop.eup %3140 }
 0x641   :  { %v1573_v50 = vadd.f32 1.0, %v3141_v12  ;;  %v3143_v17 = vpop.eup %3142 }
 0x642   :  { %v1574_v13 = vadd.f32 1.0, %v3143_v17  ;;  %v3145_v57 = vpop.eup %3144 }
 0x643   :  { %3148 = vrcp.f32 %v1573_v50  ;;  %v3147_v58 = vpop.eup %3146 }
 0x644   :  { %3150 = vrcp.f32 %v1574_v13  ;;  %v1575_v21 = vadd.f32 1.0, %v3147_v58 }
 0x646   :  { %3152 = vrcp.f32 %v1575_v21  ;;  %v1998_v21 = vld [vmem:[%s4206_s6 + $0x10] sm:$0xff] }
 0x64d   :  { %v3149_v2 = vpop.eup %3148 }
 0x64e   :  { %v1584_v5 = vmul.f32 %v3149_v2, %v3145_v57  ;;  %v3151_v11 = vpop.eup %3150  ;;  %v1997_v57 = vld [vmem:[%s4206_s6 + $0x8] sm:$0xff] }
 0x64f   :  { %v1583_v33 = vmul.f32 %v3151_v11, %v3954_v55 }
 0x650   :  { %v3153_v56 = vpop.eup %3152 }
 0x651   :  { %v1585_v48 = vadd.f32 %v1584_v5, %v1583_v33  ;;  %v1988_v5 = vld [vmem:[%s4207_s1] sm:$0xff]  ;;  %v1999_v33 = vld [vmem:[%s4206_s6 + $0x18] sm:$0xff] }
 0x653   :  { %3154 = vtanh.f32 %v1585_v48  ;;  %v1601_v40 = vsub.f32 %v1585_v48, %v3954_v55  ;;  %v1989_v48 = vld [vmem:[%s4207_s1 + $0x8] sm:$0xff] }
 0x655   :  { %v1602_v32 = vmul.f32 %v1601_v40, %v4006_v29  ;;  %v1990_v40 = vld [vmem:[%s4207_s1 + $0x10] sm:$0xff] }
 0x657   :  { %v4010_v41 = vadd.f32 %v1602_v32, %v3954_v55  ;;  %v2955_v32 = vpack.c.bf16 %v1999_v33, %v1998_v21 }
 0x65d   :  { %v3155_v37 = vpop.eup %3154 }
 0x65e   :  { %v4012_v12 = vmul.f32 %v3155_v37, %v3153_v56  ;;  %v2001_v56 = vld [vmem:[%s4206_s6 + $0x28] sm:$0xff]  ;;  %v1991_v37 = vld [vmem:[%s4207_s1 + $0x18] sm:$0xff] }
 0x660   :  { %v1598_v50 = vsub.f32 %v4012_v12, %v3962_v9 }
 0x662   :  { %v1599_v17 = vmul.f32 %v1598_v50, %v4006_v29  ;;  %v1992_v50 = vld [vmem:[%s4207_s1 + $0x20] sm:$0xff] }
 0x664   :  { %v4018_v13 = vadd.f32 %v1599_v17, %v3962_v9  ;;  %v1996_v9 = vld [vmem:[%s4206_s6] sm:$0xff] }
 0x665   :  { %v2951_v11 = vpack.c.bf16 %v1997_v57, %v1996_v9 }
 0x666   :  { %1674 = vmatmul.mubr.f32.vlgmr.msra.gmra.mrb[12].mxu0 %v4018_v13  ;;  %1745 = vmatmul.mubr.f32.vlgmr.msra.gmra.mrb[12].mxu1 %v4018_v13 }
 0x667   :  { %2890 = vmatpush1.bf16.msra.mxu0 %v3283_v16  ;;  %2922 = vmatpush1.bf16.msra.mxu1 %v3541_v23 }
 0x668   :  { %2892 = vmatprep.subr.bf16.mxu0 %v3289_v18  ;;  %2924 = vmatprep.subr.bf16.mxu1 %v3544_v26 }
 0x669   :  { %1864 = vmatprep.mubr.f32.mxu0 %v3189_v3  ;;  %1935 = vmatprep.mubr.f32.mxu1 %v3189_v3  ;;  %v2012_v3 = vld [vmem:[%s4205_s7] sm:$0xff] }
 0x66b   :  { %2894 = vmatpush1.bf16.msra.mxu0 %v3311_v24  ;;  %2926 = vmatpush1.bf16.msra.mxu1 %v3564_v35 }
 0x66c   :  { %2896 = vmatprep.subr.bf16.mxu0 %v3314_v25  ;;  %2928 = vmatprep.subr.bf16.mxu1 %v3568_v36 }
 0x66f   :  { %2898 = vmatpush1.bf16.msra.mxu0 %v3337_v31  ;;  %2930 = vmatpush1.bf16.msra.mxu1 %v3588_v42 }
 0x670   :  { %2900 = vmatprep.subr.bf16.mxu0 %v3346_v34  ;;  %2932 = vmatprep.subr.bf16.mxu1 %v3592_v43 }
 0x673   :  { %2902 = vmatpush1.bf16.msra.mxu0 %v3375_v44  ;;  %2934 = vmatpush1.bf16.msra.mxu1 %v3611_v53 }
 0x674   :  { %2904 = vmatprep.subr.bf16.mxu0 %v3378_v45  ;;  %2936 = vmatprep.subr.bf16.mxu1 %v3615_v54 }
 0x677   :  { %2906 = vmatpush1.bf16.msra.mxu0 %v3406_v51  ;;  %2938 = vmatpush1.bf16.msra.mxu1 %v3634_v60 }
 0x678   :  { %2908 = vmatprep.subr.bf16.mxu0 %v3409_v52  ;;  %2940 = vmatprep.subr.bf16.mxu1 %v3638_v61  ;;  %v4063_v61 = vpop.permute.xlu0 %1783 }
 0x67b   :  { %2910 = vmatpush1.bf16.msra.mxu0 %v3439_v59  ;;  %2942 = vmatpush1.bf16.msra.mxu1 %v3653_v7 }
 0x67c   :  { %2912 = vmatprep.subr.bf16.mxu0 %v3451_v63  ;;  %2944 = vmatprep.subr.bf16.mxu1 %v3656_v8 }
 0x67f   :  { %2914 = vmatpush1.bf16.msra.mxu0 %v3459_v0  ;;  %2946 = vmatpush1.bf16.msra.mxu1 %v3671_v14 }
 0x680   :  { %2916 = vmatprep.subr.bf16.mxu0 %v3461_v1  ;;  %2948 = vmatprep.subr.bf16.mxu1 %v3674_v19 }
 0x683   :  { %2918 = vmatpush1.bf16.msra.mxu0 %v3515_v15  ;;  %2950 = vmatpush1.bf16.msra.mxu1 %v3683_v22 }
 0x684   :  { %2369 = vmatprep.subr.mxu0 %v2012_v3 }
 0x739   :  { %v1675_v16 = vpop.f32.mrb[12].mxu0  ;;  %v1746_v18 = vpop.f32.mrb[12].mxu1 }
 0x73a   :  { %v2997_v24 = vadd.f32 %v1675_v16, %v3709_v38  ;;  %v1677_v25 = vpop.f32.mrb[13].mxu0  ;;  %v1748_v31 = vpop.f32.mrb[13].mxu1  ;;  %v3013_v51 = vadd.f32 %v1746_v18, %v3715_v4  ;;  %v1993_v16 = vld [vmem:[%s4207_s1 + $0x28] sm:$0xff]  ;;  %v1994_v18 = vld [vmem:[%s4207_s1 + $0x30] sm:$0xff] }
 0x73b   :  { %v2998_v34 = vadd.f32 %v1677_v25, %v3711_v39  ;;  %v3014_v52 = vadd.f32 %v1748_v31, %v3717_v6  ;;  %v2004_v25 = vld [vmem:[%s4206_s6 + $0x40] sm:$0xff]  ;;  %v2005_v31 = vld [vmem:[%s4206_s6 + $0x48] sm:$0xff] }
 0x73c   :  { %v2321_v44 = vmul.f32 -1.442695, %v2997_v24  ;;  %v2323_v59 = vmul.f32 -1.442695, %v3013_v51  ;;  %v2007_v51 = vld [vmem:[%s4206_s6 + $0x58] sm:$0xff] }
 0x73d   :  { %v2322_v45 = vmul.f32 -1.442695, %v2998_v34  ;;  %v1995_v34 = vld [vmem:[%s4207_s1 + $0x38] sm:$0xff] }
 0x73e   :  { %3156 = vpow2.f32 %v2321_v44  ;;  %v2967_v44 = vpack.c.bf16 %v2005_v31, %v2004_v25 }
 0x73f   :  { %3158 = vpow2.f32 %v2322_v45  ;;  %v2006_v45 = vld [vmem:[%s4206_s6 + $0x50] sm:$0xff] }
 0x740   :  { %3160 = vtanh.f32 %v3014_v52  ;;  %v2971_v52 = vpack.c.bf16 %v2007_v51, %v2006_v45 }
 0x741   :  { %3162 = vpow2.f32 %v2323_v59  ;;  %v2008_v59 = vld [vmem:[%s4206_s6 + $0x60] sm:$0xff] }
 0x748   :  { %v3157_v63 = vpop.eup %3156 }
 0x749   :  { %v1764_v0 = vadd.f32 1.0, %v3157_v63  ;;  %v3159_v1 = vpop.eup %3158  ;;  %v2009_v63 = vld [vmem:[%s4206_s6 + $0x68] sm:$0xff] }
 0x74a   :  { %v1765_v15 = vadd.f32 1.0, %v3159_v1  ;;  %v3161_v23 = vpop.eup %3160  ;;  %v2010_v1 = vld [vmem:[%s4206_s6 + $0x70] sm:$0xff] }
 0x74b   :  { %3164 = vrcp.f32 %v1764_v0  ;;  %v3163_v26 = vpop.eup %3162  ;;  %v2975_v0 = vpack.c.bf16 %v2009_v63, %v2008_v59 }
 0x74c   :  { %3166 = vrcp.f32 %v1765_v15  ;;  %v1766_v43 = vadd.f32 1.0, %v3163_v26  ;;  %v1022_v26 = vmul.f32 %v3837_v30, %v3844_v47 }
 0x74e   :  { %3168 = vrcp.f32 %v1766_v43 }
 0x755   :  { %v3165_v35 = vpop.eup %3164 }
 0x756   :  { %v1775_v36 = vmul.f32 %v3165_v35, %v3161_v23  ;;  %v3167_v42 = vpop.eup %3166  ;;  %v831_v23 = vmul.f32 %v3783_v10, %v3788_v27  ;;  %v1213_v35 = vmul.f32 %v3894_v62, %v3900_v20 }
 0x757   :  { %v1774_v53 = vmul.f32 %v3167_v42, %v4010_v41  ;;  %v1595_v42 = vmul.f32 %v4006_v29, %v4012_v12 }
 0x758   :  { %v3169_v14 = vpop.eup %3168 }
 0x759   :  { %v1776_v54 = vadd.f32 %v1775_v36, %v1774_v53  ;;  %v1404_v36 = vmul.f32 %v3950_v46, %v3956_v28 }
 0x75b   :  { %3170 = vtanh.f32 %v1776_v54  ;;  %v1792_v60 = vsub.f32 %v1776_v54, %v4010_v41 }
 0x75d   :  { %v1793_v7 = vmul.f32 %v1792_v60, %v4063_v61 }
 0x75f   :  { %v4067_v8 = vadd.f32 %v1793_v7, %v4010_v41  ;;  %v2000_v41 = vld [vmem:[%s4206_s6 + $0x20] sm:$0xff] }
 0x760   :  { %v2959_v17 = vpack.c.bf16 %v2001_v56, %v2000_v41 }
 0x765   :  { %v3171_v19 = vpop.eup %3170 }
 0x766   :  { %v4069_v22 = vmul.f32 %v3171_v19, %v3169_v14 }
 0x768   :  { %v1789_v55 = vsub.f32 %v4069_v22, %v4018_v13  ;;  %v1786_v43 = vmul.f32 %v4063_v61, %v4069_v22 }
 0x76a   :  { %v1790_v58 = vmul.f32 %v1789_v55, %v4063_v61 }
 0x76c   :  { %v1791_v2 = vadd.f32 %v1790_v58, %v4018_v13  ;;  %v2002_v13 = vld [vmem:[%s4206_s6 + $0x30] sm:$0xff] }
 0x76e   :  { %1865 = vmatmul.mubr.f32.vlgmr.msra.gmra.mrb[14].mxu0 %v1791_v2  ;;  %1936 = vmatmul.mubr.f32.vlgmr.msra.gmra.mrb[14].mxu1 %v1791_v2 }
 0x76f   :  { %2370 = vmatpush3.msra.mxu0 %v2012_v3  ;;  %2371 = vmatprep.mubr.msk.f32.mxu0 %vm2013_vm13, %v1988_v5  ;;  %v2003_v3 = vld [vmem:[%s4206_s6 + $0x38] sm:$0xff] }
 0x770   :  { %2952 = vmatprep.subr.bf16.mxu0 %v2951_v11  ;;  %v2963_v24 = vpack.c.bf16 %v2003_v3, %v2002_v13 }
 0x772   :  { %2372 = vmatmul.mubr.msk.f32.vlgmr.msra.gmra.mrb[16].mxu0 %vm2013_vm13, %v1989_v48 }
 0x773   :  { %2954 = vmatpush3.bf16.msra.mxu0 %v2951_v11  ;;  %2374 = vmatprep.mubr.msk.f32.mxu0 %vm2013_vm13, %v1990_v40 }
 0x774   :  { %2956 = vmatprep.subr.bf16.mxu0 %v2955_v32 }
 0x776   :  { %2375 = vmatmul.mubr.msk.f32.gmra.mrb[18].mxu0 %vm2013_vm13, %v1991_v37 }
 0x777   :  { %2958 = vmatpush3.bf16.msra.mxu0 %v2955_v32  ;;  %2377 = vmatprep.mubr.msk.f32.mxu0 %vm2013_vm13, %v1992_v50 }
 0x778   :  { %2960 = vmatprep.subr.bf16.mxu0 %v2959_v17 }
 0x77a   :  { %2378 = vmatmul.mubr.msk.f32.gmra.mrb[20].mxu0 %vm2013_vm13, %v1993_v16 }
 0x77b   :  { %2962 = vmatpush3.bf16.msra.mxu0 %v2959_v17  ;;  %2380 = vmatprep.mubr.msk.f32.mxu0 %vm2013_vm13, %v1994_v18  ;;  %v1975_v17 = vpop.permute.xlu1 %1974 }
 0x77c   :  { %2964 = vmatprep.subr.bf16.mxu0 %v2963_v24 }
 0x77e   :  { %2381 = vmatmul.mubr.msk.f32.gmra.mrb[22].mxu0 %vm2013_vm13, %v1995_v34 }
 0x77f   :  { %2966 = vmatpush3.bf16.msra.mxu0 %v2963_v24  ;;  %2415 = vmatprep.mubr.f32.mxu0 %v3727_v49  ;;  %v2011_v49 = vld [vmem:[%s4206_s6 + $0x78] sm:$0xff] }
 0x780   :  { %2968 = vmatprep.subr.bf16.mxu0 %v2967_v44  ;;  %v2979_v15 = vpack.c.bf16 %v2011_v49, %v2010_v1 }
 0x783   :  { %2970 = vmatpush3.bf16.msra.mxu0 %v2967_v44 }
 0x784   :  { %2972 = vmatprep.subr.bf16.mxu0 %v2971_v52 }
 0x787   :  { %2974 = vmatpush3.bf16.msra.mxu0 %v2971_v52 }
 0x788   :  { %2976 = vmatprep.subr.bf16.mxu0 %v2975_v0 }
 0x78b   :  { %2978 = vmatpush3.bf16.msra.mxu0 %v2975_v0 }
 0x78c   :  { %2980 = vmatprep.subr.bf16.mxu0 %v2979_v15 }
 0x78f   :  { %2982 = vmatpush3.bf16.msra.mxu0 %v2979_v15 }
 0x792   :  { %2416 = vmatmul.mubr.f32.vlgmr.msra.gmra.mrb[16].mxu0 %v831_v23 }
 0x793   :  { %2418 = vmatprep.mubr.f32.mxu0 %v1022_v26 }
 0x796   :  { %2419 = vmatmul.mubr.f32.gmra.mrb[18].mxu0 %v1213_v35 }
 0x797   :  { %2421 = vmatprep.mubr.f32.mxu0 %v1404_v36 }
 0x79a   :  { %2422 = vmatmul.mubr.f32.gmra.mrb[20].mxu0 %v1595_v42 }
 0x79b   :  { %2424 = vmatprep.mubr.f32.mxu0 %v1786_v43 }
 0x841   :  { %v1866_v10 = vpop.f32.mrb[14].mxu0  ;;  %v1937_v27 = vpop.f32.mrb[14].mxu1 }
 0x842   :  { %v2999_v30 = vadd.f32 %v1866_v10, %v3709_v38  ;;  %v1868_v47 = vpop.f32.mrb[15].mxu0  ;;  %v1939_v53 = vpop.f32.mrb[15].mxu1  ;;  %v3015_v28 = vadd.f32 %v1937_v27, %v3715_v4 }
 0x843   :  { %v3000_v62 = vadd.f32 %v1868_v47, %v3711_v39  ;;  %v3016_v29 = vadd.f32 %v1939_v53, %v3717_v6  ;;  %v2335_v6 = vld [vmem:[%s4208_s8] ss:$0 sm:$0xff] }
 0x844   :  { %v2324_v20 = vmul.f32 -1.442695, %v2999_v30  ;;  %v2326_v12 = vmul.f32 -1.442695, %v3015_v28 }
 0x845   :  { %v2325_v46 = vmul.f32 -1.442695, %v3000_v62 }
 0x846   :  { %3172 = vpow2.f32 %v2324_v20 }
 0x847   :  { %3174 = vpow2.f32 %v2325_v46 }
 0x848   :  { %3176 = vtanh.f32 %v3016_v29 }
 0x849   :  { %3178 = vpow2.f32 %v2326_v12 }
 0x850   :  { %v3173_v54 = vpop.eup %3172 }
 0x851   :  { %v1955_v60 = vadd.f32 1.0, %v3173_v54  ;;  %v3175_v61 = vpop.eup %3174 }
 0x852   :  { %v1956_v38 = vadd.f32 1.0, %v3175_v61  ;;  %v3177_v7 = vpop.eup %3176 }
 0x853   :  { %3180 = vrcp.f32 %v1955_v60  ;;  %v3179_v14 = vpop.eup %3178 }
 0x854   :  { %3182 = vrcp.f32 %v1956_v38  ;;  %v1957_v55 = vadd.f32 1.0, %v3179_v14 }
 0x856   :  { %3184 = vrcp.f32 %v1957_v55 }
 0x85d   :  { %v3181_v39 = vpop.eup %3180 }
 0x85e   :  { %v1966_v19 = vmul.f32 %v3181_v39, %v3177_v7  ;;  %v3183_v22 = vpop.eup %3182 }
 0x85f   :  { %v1965_v9 = vmul.f32 %v3183_v22, %v4067_v8 }
 0x860   :  { %v3185_v48 = vpop.eup %3184 }
 0x861   :  { %v1967_v4 = vadd.f32 %v1966_v19, %v1965_v9 }
 0x863   :  { %3186 = vtanh.f32 %v1967_v4 }
 0x865   :  { %v2417_v57 = vpop.f32.mrb[16].mxu0 }
 0x866   :  { %v2256_v58 = vadd.f32 %v2417_v57, %v2335_v6  ;;  %v2209_v2 = vpop.f32.mrb[17].mxu0 }
 0x867   :  { %v2255_v5 = vadd.f32 %v2335_v6, %v2209_v2 }
 0x868   :  { %2264 = vst [vmem:[%s4209_s9 + $0x8] sm:$0xff] %v2256_v58 }
 0x869   :  { %2263 = vst [vmem:[%s4209_s9] sm:$0xff] %v2255_v5  ;;  %v2420_v8 = vpop.f32.mrb[18].mxu0 }
 0x86a   :  { %v2258_v11 = vadd.f32 %v2420_v8, %v2335_v6  ;;  %v2219_v21 = vpop.f32.mrb[19].mxu0 }
 0x86b   :  { %v2257_v33 = vadd.f32 %v2335_v6, %v2219_v21 }
 0x86c   :  { %2266 = vst [vmem:[%s4209_s9 + $0x18] sm:$0xff] %v2258_v11 }
 0x86d   :  { %2265 = vst [vmem:[%s4209_s9 + $0x10] sm:$0xff] %v2257_v33  ;;  %v2423_v40 = vpop.f32.mrb[20].mxu0  ;;  %v3187_v32 = vpop.eup %3186 }
 0x86e   :  { %v2260_v41 = vadd.f32 %v2423_v40, %v2335_v6  ;;  %v2229_v56 = vpop.f32.mrb[21].mxu0  ;;  %v1969_v50 = vmul.f32 %v3187_v32, %v3185_v48 }
 0x86f   :  { %v2259_v37 = vadd.f32 %v2335_v6, %v2229_v56 }
 0x870   :  { %2268 = vst [vmem:[%s4209_s9 + $0x28] sm:$0xff] %v2260_v41  ;;  %v1977_v13 = vmul.f32 %v1975_v17, %v1969_v50 }
 0x871   :  { %2267 = vst [vmem:[%s4209_s9 + $0x20] sm:$0xff] %v2259_v37 }
 0x872   :  { %2425 = vmatmul.mubr.f32.gmra.mrb[22].mxu0 %v1977_v13 }
 0x945   :  { %v2426_v3 = vpop.f32.mrb[22].mxu0 }
 0x946   :  { %v2262_v16 = vadd.f32 %v2426_v3, %v2335_v6  ;;  %v2239_v18 = vpop.f32.mrb[23].mxu0 }
 0x947   :  { %v2261_v24 = vadd.f32 %v2335_v6, %v2239_v18 }
 0x948   :  { %2270 = vst [vmem:[%s4209_s9 + $0x38] sm:$0xff] %v2262_v16 }
 0x949   :  { %2269 = vst [vmem:[%s4209_s9 + $0x30] sm:$0xff] %v2261_v24 }

</bundles_post_ra>
